<compile_context>
chip_gen: v7x
topology: tpu7x:2x2x1
jax: 0.10.0
libtpu: 0.0.40
codegen_flags: <defaults>
</compile_context>

<pallas_src>
import jax
import jax.numpy as jnp
from jax import lax
from jax.experimental import pallas as pl
from jax.experimental.pallas import tpu as pltpu

# ---- constants from the module -------------------------------------------
FOCAL_ALPHA = 0.25          # _neg_loss default alpha
ASL_GAMMA_NEG = 4.0         # AsymmetricLossOptimized(gamma_neg=4, gamma_pos=0,
ASL_GAMMA_POS = 0.0         #                        clip=0.05, alpha=0.5)
ASL_CLIP = 0.05
ASL_ALPHA = 0.5
ASL_EPS = 1e-8
SIG_CLAMP = 1e-4            # _sigmoid clamp
GIOU_EPS = 1e-7             # guard against 0/0 on degenerate boxes
PAD_GT = 2.0                # instance-target pad: (==1) and (<1) both False
PAD_LOGIT = -30.0           # nvi-logit pad: exact-zero ASL contribution
OUT_LANES = 128


def _round_up(x, m):
    return ((x + m - 1) // m) * m


def _stable_sigmoid_parts(x):
    """(sigmoid(x), log(sigmoid(x)), log(1-sigmoid(x))) — one exp, one log,
    one reciprocal, no saturation to exactly 0/1 (so no -inf logs)."""
    e = jnp.exp(-jnp.abs(x))
    one_p = 1.0 + e
    t = jnp.log(one_p)                   # softplus(-|x|)
    r = 1.0 / one_p
    p = jnp.where(x >= 0.0, r, e * r)    # sigmoid(x)
    log_p = jnp.minimum(x, 0.0) - t      # log(sigmoid(x))    = -softplus(-x)
    log_1mp = -jnp.maximum(x, 0.0) - t   # log(1-sigmoid(x))  = -softplus(x)
    return p, log_p, log_1mp


def _giou_cols(a, c):
    """GIoU per column. a, c: (4, N) with rows (cx, cy, w, h)."""
    ax1 = a[0:1] - 0.5 * a[2:3]; ay1 = a[1:2] - 0.5 * a[3:4]
    ax2 = a[0:1] + 0.5 * a[2:3]; ay2 = a[1:2] + 0.5 * a[3:4]
    cx1 = c[0:1] - 0.5 * c[2:3]; cy1 = c[1:2] - 0.5 * c[3:4]
    cx2 = c[0:1] + 0.5 * c[2:3]; cy2 = c[1:2] + 0.5 * c[3:4]
    area_a = (ax2 - ax1) * (ay2 - ay1)
    area_c = (cx2 - cx1) * (cy2 - cy1)
    iw = jnp.maximum(jnp.minimum(ax2, cx2) - jnp.maximum(ax1, cx1), 0.0)
    ih = jnp.maximum(jnp.minimum(ay2, cy2) - jnp.maximum(ay1, cy1), 0.0)
    inter = iw * ih
    union = area_a + area_c - inter
    iou = inter / (union + GIOU_EPS)
    ew = jnp.maximum(ax2, cx2) - jnp.minimum(ax1, cx1)
    eh = jnp.maximum(ay2, cy2) - jnp.minimum(ay1, cy1)
    earea = jnp.maximum(ew, 0.0) * jnp.maximum(eh, 0.0)
    return iou - (earea - union) / (earea + GIOU_EPS)          # (1, N)


# ===========================================================================
# Fused kernel: instances + inst_group_boxes + attributes, single launch.
# Output lanes: 0 pos_sum, 1 neg_sum, 2 n_pos, 3 l1_sub, 4 l1_obj(masked),
#               5 giou_sub, 6 giou_obj(masked), 7 exist_sum, 8 asl_sum.
# ===========================================================================
def _make_fused_kernel(n_box, n_box_pad):
    def kernel(inst_logit_ref, inst_tgt_ref, boxes_ref,
               nvi_logit_ref, nvi_tgt_ref, out_ref):
        step = pl.program_id(0)
        lane = lax.broadcasted_iota(jnp.int32, (1, OUT_LANES), 1)

        # ---- attributes (_sigmoid + ASL), partial over this row tile ------
        x = nvi_logit_ref[...].astype(jnp.float32)
        y = nvi_tgt_ref[...].astype(jnp.float32)          # binary multi-hot
        e = jnp.exp(-jnp.abs(x))
        r = 1.0 / (1.0 + e)
        p = jnp.where(x >= 0.0, r, e * r)                 # sigmoid(x), stable
        p = jnp.clip(p, SIG_CLAMP, 1.0 - SIG_CLAMP)       # _sigmoid clamp
        xs_neg = jnp.minimum(1.0 - p + ASL_CLIP, 1.0)
        sel = y * p + (1.0 - y) * xs_neg                  # binary-target select
        log_sel = jnp.log(jnp.maximum(sel, ASL_EPS))      # single log/elem
        base = jnp.maximum(1.0 - sel, 0.0)
        b2 = base * base
        # gamma_pos=0 -> weight alpha on positives; gamma_neg=4 -> base^4.
        w = jnp.where(y > 0.5, ASL_ALPHA, (1.0 - ASL_ALPHA) * b2 * b2)
        asl_part = -jnp.sum(log_sel * w)

        @pl.when(step == 0)
        def _init():
            # ---- instances: modified focal (_neg_loss) ---------------------
            xl = inst_logit_ref[...].astype(jnp.float32)
            gt = inst_tgt_ref[...]
            pq, log_p, log_1mp = _stable_sigmoid_parts(xl)
            pos = (gt == 1.0).astype(jnp.float32)         # pads (=2.0) -> 0
            neg = (gt < 1.0).astype(jnp.float32)          # pads (=2.0) -> 0
            one_m = 1.0 - pq
            pos_sum = jnp.sum(FOCAL_ALPHA * log_p * one_m * one_m * pos)
            neg_sum = jnp.sum((1.0 - FOCAL_ALPHA) * log_1mp * pq * pq * neg)
            n_pos = jnp.sum(pos)

            # ---- matched boxes: L1 + diag(GIoU) ---------------------------
            b = boxes_ref[...].astype(jnp.float32)        # (16, Np)
            ss, so = b[0:4], b[4:8]                       # pred inst / group
            ts, to = b[8:12], b[12:16]                    # tgt  inst / group
            col = lax.broadcasted_iota(jnp.int32, (1, n_box_pad), 1)
            valid = (col < n_box).astype(jnp.float32)
            exist = jnp.max((to != 0.0).astype(jnp.float32), axis=0,
                            keepdims=True) * valid        # exist_obj_boxes
            l1_s = jnp.sum(jnp.abs(ss - ts) * valid)
            l1_o = jnp.sum(jnp.abs(so - to) * exist)
            g_s = jnp.sum((1.0 - _giou_cols(ss, ts)) * valid)
            g_o = jnp.sum((1.0 - _giou_cols(so, to)) * exist)
            ex = jnp.sum(exist)

            vals = (pos_sum, neg_sum, n_pos, l1_s, l1_o, g_s, g_o, ex, asl_part)
            row = jnp.zeros((1, OUT_LANES), jnp.float32)
            for k, v in enumerate(vals):
                row = row + jnp.where(lane == k, v, 0.0)
            out_ref[...] = row

        @pl.when(step != 0)
        def _acc():
            out_ref[...] = out_ref[...] + jnp.where(lane == 8, asl_part, 0.0)

    return kernel


def _fused_sums(inst_logits_p, inst_tgt_p, boxes_p, nvi_logits_p, nvi_tgt_p,
                n_box, tile_rows):
    p_bq = inst_logits_p.shape[1]
    n_pad = boxes_p.shape[1]
    r_pad, c_pad = nvi_logits_p.shape
    num_tiles = r_pad // tile_rows
    kernel = _make_fused_kernel(n_box, n_pad)
    return pl.pallas_call(
        kernel,
        grid=(num_tiles,),
        in_specs=[
            pl.BlockSpec((1, p_bq), lambda i: (0, 0)),
            pl.BlockSpec((1, p_bq), lambda i: (0, 0)),
            pl.BlockSpec((16, n_pad), lambda i: (0, 0)),
            pl.BlockSpec((tile_rows, c_pad), lambda i: (i, 0)),
            pl.BlockSpec((tile_rows, c_pad), lambda i: (i, 0)),
        ],
        out_specs=pl.BlockSpec((1, OUT_LANES), lambda i: (0, 0)),
        out_shape=jax.ShapeDtypeStruct((1, OUT_LANES), jnp.float32),
        compiler_params=pltpu.CompilerParams(
            dimension_semantics=("arbitrary",)),
    )(inst_logits_p, inst_tgt_p, boxes_p, nvi_logits_p, nvi_tgt_p)


# ===========================================================================
# Criterion wrapper (gather/scatter of matched indices + final scalar math).
# ===========================================================================
def simple_matcher(outputs, targets):
    # TODO(synk): Hungarian matching (scipy.optimize.linear_sum_assignment)
    # has no clean Pallas/TPU equivalent; identity matching stands in.
    indices = []
    for t in targets:
        n = int(t['inst_boxes'].shape[0])
        idx = jnp.arange(n, dtype=jnp.int32)
        indices.append((idx, idx))
    return indices


def set_criterion_hoi_forward(outputs, targets,
                              losses=('instances', 'inst_group_boxes', 'attributes'),
                              tile_rows=256):
    indices = simple_matcher(outputs, targets)
    # TODO(synk): distributed all_reduce(num_boxes) / get_world_size omitted.
    num_boxes = float(max(sum(int(t['inst_boxes'].shape[0]) for t in targets), 1))

    # --- instances: lane-dense [1, pad(B*Q,128)] --------------------------
    obj_logits = outputs['pred_obj_logits'][..., 0]            # [B,Q] native dtype
    B, Q = obj_logits.shape
    inst_tgt = jnp.zeros((B, Q), jnp.float32)
    for b, (src, _) in enumerate(indices):
        if int(src.shape[0]) > 0:
            inst_tgt = inst_tgt.at[b, src].set(1.0)
    bq = B * Q
    p_bq = _round_up(bq, 128)
    inst_logits_p = jnp.zeros((1, p_bq), obj_logits.dtype)
    inst_logits_p = inst_logits_p.at[0, :bq].set(obj_logits.reshape(-1))
    inst_tgt_p = jnp.full((1, p_bq), PAD_GT, jnp.float32)
    inst_tgt_p = inst_tgt_p.at[0, :bq].set(inst_tgt.reshape(-1))

    # --- attributes: lane-dense [pad(B*Q,tile), pad(C,128)] ---------------
    nvi_logits = outputs['pred_nvi_logits']                    # [B,Q,C] native dtype
    C = nvi_logits.shape[-1]
    nvi_tgt = jnp.zeros((B, Q, C), jnp.float32)
    for b, (src, tgt) in enumerate(indices):
        if int(src.shape[0]) > 0:
            nvi_tgt = nvi_tgt.at[b, src].set(
                targets[b]['attributes'][tgt].astype(jnp.float32))
    tile_rows = max(8, _round_up(min(int(tile_rows), _round_up(bq, 8)), 8))
    r_pad = _round_up(bq, tile_rows)
    c_pad = _round_up(C, 128)
    nvi_logits_p = jnp.full((r_pad, c_pad), PAD_LOGIT, nvi_logits.dtype)
    nvi_logits_p = nvi_logits_p.at[:bq, :C].set(nvi_logits.reshape(bq, C))
    nvi_tgt_p = jnp.zeros((r_pad, c_pad), jnp.float32)
    nvi_tgt_p = nvi_tgt_p.at[:bq, :C].set(nvi_tgt.reshape(bq, C))

    # --- matched boxes: transposed [16, pad(N,128)] slab ------------------
    src_sub, src_obj, tgt_sub, tgt_obj = [], [], [], []
    for b, (src, tgt) in enumerate(indices):
        src_sub.append(outputs['pred_inst_boxes'][b, src])
        src_obj.append(outputs['pred_group_boxes'][b, src])
        tgt_sub.append(targets[b]['inst_boxes'][tgt])
        tgt_obj.append(targets[b]['group_boxes'][tgt])
    src_sub = jnp.concatenate(src_sub, 0)
    src_obj = jnp.concatenate(src_obj, 0)
    tgt_sub = jnp.concatenate(tgt_sub, 0)
    tgt_obj = jnp.concatenate(tgt_obj, 0)
    n_box = int(src_sub.shape[0])
    n_pad = _round_up(max(n_box, 1), 128)
    boxes_p = jnp.zeros((16, n_pad), jnp.float32)
    if n_box > 0:
        stacked = jnp.concatenate(
            [src_sub.T, src_obj.T, tgt_sub.T, tgt_obj.T], 0).astype(jnp.float32)
        boxes_p = boxes_p.at[:, :n_box].set(stacked)

    sums = _fused_sums(inst_logits_p, inst_tgt_p, boxes_p,
                       nvi_logits_p, nvi_tgt_p, n_box, tile_rows)[0]
    pos_sum, neg_sum, n_pos = sums[0], sums[1], sums[2]
    l1_s, l1_o, g_s, g_o, ex = sums[3], sums[4], sums[5], sums[6], sums[7]
    asl = sums[8]

    result = {}
    if 'instances' in losses:
        result['loss_instance'] = jnp.where(
            n_pos == 0, -neg_sum, -(pos_sum + neg_sum) / n_pos)
    if 'inst_group_boxes' in losses:
        result['loss_inst_bbox'] = l1_s / num_boxes
        result['loss_group_bbox'] = l1_o / (ex + 0.0001)
        result['loss_inst_giou'] = g_s / num_boxes
        result['loss_group_giou'] = g_o / (ex + 0.0001)
    if 'attributes' in losses:
        result['loss_nvi_labels'] = asl
    return result


# ===========================================================================
if __name__ == "__main__":
    key = jax.random.PRNGKey(0)
    B, Q, C = 2, 8, 32          # batch, num_queries, attribute classes
    k = jax.random.split(key, 8)

    outputs = {
        'pred_obj_logits': jax.random.normal(k[0], (B, Q, 1), jnp.float32),
        'pred_inst_boxes': jax.nn.sigmoid(jax.random.normal(k[1], (B, Q, 4), jnp.float32)),
        'pred_group_boxes': jax.nn.sigmoid(jax.random.normal(k[2], (B, Q, 4), jnp.float32)),
        'pred_nvi_logits': jax.random.normal(k[3], (B, Q, C), jnp.float32),
    }

    n_gt = [3, 2]
    targets = []
    for b in range(B):
        kk = jax.random.split(k[4 + b], 3)
        group = jax.nn.sigmoid(jax.random.normal(kk[1], (n_gt[b], 4), jnp.float32))
        group = group.at[0].set(0.0)   # exercise the exist_obj_boxes mask
        targets.append({
            'inst_boxes': jax.nn.sigmoid(jax.random.normal(kk[0], (n_gt[b], 4), jnp.float32)),
            'group_boxes': group,
            'attributes': (jax.random.uniform(kk[2], (n_gt[b], C)) > 0.7).astype(jnp.float32),
        })

    # tile_rows=8 -> 2 grid steps at this toy size, exercising the
    # resident-output accumulation path.
    loss_dict = set_criterion_hoi_forward(outputs, targets, tile_rows=8)
    loss_dict = {name: jax.block_until_ready(v) for name, v in loss_dict.items()}
    for name, v in sorted(loss_dict.items()):
        assert bool(jnp.isfinite(v)), name
    print("KERNEL_OK")
</pallas_src>

<mosaic_0001>
module attributes {stable_mosaic.version = 11 : i64} {
  func.func @kernel(%arg0: i32, %arg1: memref<1x128xf32, #tpu.memory_space<vmem>>, %arg2: memref<1x128xf32, #tpu.memory_space<vmem>>, %arg3: memref<16x128xf32, #tpu.memory_space<vmem>>, %arg4: memref<8x128xf32, #tpu.memory_space<vmem>>, %arg5: memref<8x128xf32, #tpu.memory_space<vmem>>, %arg6: memref<1x128xf32, #tpu.memory_space<vmem>>) attributes {dimension_semantics = [#tpu.dimension_semantics<arbitrary>], iteration_bounds = array<i64: 2>, scalar_prefetch = 0 : i64, scratch_operands = 0 : i64, tpu.core_type = #tpu.core_type<tc>, window_params = [{pipeline_mode = #tpu.pipeline_mode<synchronous>, transform_indices = @transform_0, window_bounds = array<i64: 1, 128>}, {pipeline_mode = #tpu.pipeline_mode<synchronous>, transform_indices = @transform_1, window_bounds = array<i64: 1, 128>}, {pipeline_mode = #tpu.pipeline_mode<synchronous>, transform_indices = @transform_2, window_bounds = array<i64: 16, 128>}, {transform_indices = @transform_3, window_bounds = array<i64: 8, 128>}, {transform_indices = @transform_4, window_bounds = array<i64: 8, 128>}, {pipeline_mode = #tpu.pipeline_mode<synchronous>, transform_indices = @transform_5, window_bounds = array<i64: 1, 128>}]} {
    %0 = tpu.iota {dimensions = array<i32: 1>} : vector<1x128xi32>
    %c0 = arith.constant 0 : index
    %c0_0 = arith.constant 0 : index
    %1 = vector.load %arg4[%c0, %c0_0] : memref<8x128xf32, #tpu.memory_space<vmem>>, vector<8x128xf32>
    %c0_1 = arith.constant 0 : index
    %c0_2 = arith.constant 0 : index
    %2 = vector.load %arg5[%c0_1, %c0_2] : memref<8x128xf32, #tpu.memory_space<vmem>>, vector<8x128xf32>
    %3 = math.absf %1 : vector<8x128xf32>
    %cst = arith.constant 0.000000e+00 : f32
    %4 = vector.broadcast %cst : f32 to vector<8x128xf32>
    %5 = arith.subf %4, %3 : vector<8x128xf32>
    %6 = math.exp %5 : vector<8x128xf32>
    %cst_3 = arith.constant 1.000000e+00 : f32
    %7 = vector.broadcast %cst_3 : f32 to vector<8x128xf32>
    %8 = arith.addf %7, %6 : vector<8x128xf32>
    %cst_4 = arith.constant 1.000000e+00 : f32
    %9 = vector.broadcast %cst_4 : f32 to vector<8x128xf32>
    %10 = arith.divf %9, %8 : vector<8x128xf32>
    %cst_5 = arith.constant 0.000000e+00 : f32
    %11 = vector.broadcast %cst_5 : f32 to vector<8x128xf32>
    %12 = arith.cmpf oge, %1, %11 : vector<8x128xf32>
    %13 = arith.mulf %6, %10 : vector<8x128xf32>
    %14 = arith.select %12, %10, %13 : vector<8x128xi1>, vector<8x128xf32>
    %cst_6 = arith.constant 9.99999974E-5 : f32
    %cst_7 = arith.constant 0.999899983 : f32
    %15 = vector.broadcast %cst_6 : f32 to vector<8x128xf32>
    %16 = arith.maximumf %15, %14 : vector<8x128xf32>
    %17 = vector.broadcast %cst_7 : f32 to vector<8x128xf32>
    %18 = arith.minimumf %17, %16 : vector<8x128xf32>
    %cst_8 = arith.constant 1.000000e+00 : f32
    %19 = vector.broadcast %cst_8 : f32 to vector<8x128xf32>
    %20 = arith.subf %19, %18 : vector<8x128xf32>
    %cst_9 = arith.constant 5.000000e-02 : f32
    %21 = vector.broadcast %cst_9 : f32 to vector<8x128xf32>
    %22 = arith.addf %20, %21 : vector<8x128xf32>
    %cst_10 = arith.constant 1.000000e+00 : f32
    %23 = vector.broadcast %cst_10 : f32 to vector<8x128xf32>
    %24 = arith.minimumf %22, %23 : vector<8x128xf32>
    %25 = arith.mulf %2, %18 : vector<8x128xf32>
    %cst_11 = arith.constant 1.000000e+00 : f32
    %26 = vector.broadcast %cst_11 : f32 to vector<8x128xf32>
    %27 = arith.subf %26, %2 : vector<8x128xf32>
    %28 = arith.mulf %27, %24 : vector<8x128xf32>
    %29 = arith.addf %25, %28 : vector<8x128xf32>
    %cst_12 = arith.constant 9.99999993E-9 : f32
    %30 = vector.broadcast %cst_12 : f32 to vector<8x128xf32>
    %31 = arith.maximumf %29, %30 : vector<8x128xf32>
    %32 = math.log %31 : vector<8x128xf32>
    %cst_13 = arith.constant 1.000000e+00 : f32
    %33 = vector.broadcast %cst_13 : f32 to vector<8x128xf32>
    %34 = arith.subf %33, %29 : vector<8x128xf32>
    %cst_14 = arith.constant 0.000000e+00 : f32
    %35 = vector.broadcast %cst_14 : f32 to vector<8x128xf32>
    %36 = arith.maximumf %34, %35 : vector<8x128xf32>
    %37 = arith.mulf %36, %36 : vector<8x128xf32>
    %cst_15 = arith.constant 5.000000e-01 : f32
    %38 = vector.broadcast %cst_15 : f32 to vector<8x128xf32>
    %39 = arith.cmpf ogt, %2, %38 : vector<8x128xf32>
    %cst_16 = arith.constant 5.000000e-01 : f32
    %40 = vector.broadcast %cst_16 : f32 to vector<8x128xf32>
    %41 = arith.mulf %40, %37 : vector<8x128xf32>
    %42 = arith.mulf %41, %37 : vector<8x128xf32>
    %cst_17 = arith.constant 5.000000e-01 : f32
    %43 = vector.broadcast %cst_17 : f32 to vector<8x128xf32>
    %44 = arith.select %39, %43, %42 : vector<8x128xi1>, vector<8x128xf32>
    %45 = arith.mulf %32, %44 : vector<8x128xf32>
    %46 = vector.shape_cast %45 : vector<8x128xf32> to vector<1x8x128xf32>
    %cst_18 = arith.constant dense<0.000000e+00> : vector<1xf32>
    %47 = vector.multi_reduction <add>, %46, %cst_18 [1, 2] : vector<1x8x128xf32> to vector<1xf32>
    %48 = vector.shape_cast %47 : vector<1xf32> to vector<1x1x1xf32>
    %49 = vector.extract %48[0, 0, 0] : f32 from vector<1x1x1xf32>
    %cst_19 = arith.constant 0.000000e+00 : f32
    %50 = arith.subf %cst_19, %49 : f32
    %c0_i32 = arith.constant 0 : i32
    %51 = arith.cmpi eq, %arg0, %c0_i32 : i32
    %52 = arith.extui %51 : i1 to i32
    %c0_i32_20 = arith.constant 0 : i32
    %53 = arith.cmpi ne, %52, %c0_i32_20 : i32
    scf.if %53 {
      %c0_23 = arith.constant 0 : index
      %c0_24 = arith.constant 0 : index
      %57 = vector.load %arg1[%c0_23, %c0_24] : memref<1x128xf32, #tpu.memory_space<vmem>>, vector<1x128xf32>
      %c0_25 = arith.constant 0 : index
      %c0_26 = arith.constant 0 : index
      %58 = vector.load %arg2[%c0_25, %c0_26] : memref<1x128xf32, #tpu.memory_space<vmem>>, vector<1x128xf32>
      %59 = math.absf %57 : vector<1x128xf32>
      %cst_27 = arith.constant 0.000000e+00 : f32
      %60 = vector.broadcast %cst_27 : f32 to vector<1x128xf32>
      %61 = arith.subf %60, %59 : vector<1x128xf32>
      %62 = math.exp %61 : vector<1x128xf32>
      %cst_28 = arith.constant 1.000000e+00 : f32
      %63 = vector.broadcast %cst_28 : f32 to vector<1x128xf32>
      %64 = arith.addf %63, %62 : vector<1x128xf32>
      %65 = math.log %64 : vector<1x128xf32>
      %cst_29 = arith.constant 1.000000e+00 : f32
      %66 = vector.broadcast %cst_29 : f32 to vector<1x128xf32>
      %67 = arith.divf %66, %64 : vector<1x128xf32>
      %cst_30 = arith.constant 0.000000e+00 : f32
      %68 = vector.broadcast %cst_30 : f32 to vector<1x128xf32>
      %69 = arith.cmpf oge, %57, %68 : vector<1x128xf32>
      %70 = arith.mulf %62, %67 : vector<1x128xf32>
      %71 = arith.select %69, %67, %70 : vector<1x128xi1>, vector<1x128xf32>
      %cst_31 = arith.constant 0.000000e+00 : f32
      %72 = vector.broadcast %cst_31 : f32 to vector<1x128xf32>
      %73 = arith.minimumf %57, %72 : vector<1x128xf32>
      %74 = arith.subf %73, %65 : vector<1x128xf32>
      %cst_32 = arith.constant 0.000000e+00 : f32
      %75 = vector.broadcast %cst_32 : f32 to vector<1x128xf32>
      %76 = arith.maximumf %57, %75 : vector<1x128xf32>
      %cst_33 = arith.constant 0.000000e+00 : f32
      %77 = vector.broadcast %cst_33 : f32 to vector<1x128xf32>
      %78 = arith.subf %77, %76 : vector<1x128xf32>
      %79 = arith.subf %78, %65 : vector<1x128xf32>
      %cst_34 = arith.constant 1.000000e+00 : f32
      %80 = vector.broadcast %cst_34 : f32 to vector<1x128xf32>
      %81 = arith.cmpf oeq, %58, %80 : vector<1x128xf32>
      %82 = arith.extui %81 : vector<1x128xi1> to vector<1x128xi32>
      %83 = arith.sitofp %82 : vector<1x128xi32> to vector<1x128xf32>
      %cst_35 = arith.constant 1.000000e+00 : f32
      %84 = vector.broadcast %cst_35 : f32 to vector<1x128xf32>
      %85 = arith.cmpf olt, %58, %84 : vector<1x128xf32>
      %86 = arith.extui %85 : vector<1x128xi1> to vector<1x128xi32>
      %87 = arith.sitofp %86 : vector<1x128xi32> to vector<1x128xf32>
      %cst_36 = arith.constant 1.000000e+00 : f32
      %88 = vector.broadcast %cst_36 : f32 to vector<1x128xf32>
      %89 = arith.subf %88, %71 : vector<1x128xf32>
      %cst_37 = arith.constant 2.500000e-01 : f32
      %90 = vector.broadcast %cst_37 : f32 to vector<1x128xf32>
      %91 = arith.mulf %90, %74 : vector<1x128xf32>
      %92 = arith.mulf %91, %89 : vector<1x128xf32>
      %93 = arith.mulf %92, %89 : vector<1x128xf32>
      %94 = arith.mulf %93, %83 : vector<1x128xf32>
      %95 = vector.shape_cast %94 : vector<1x128xf32> to vector<1x1x128xf32>
      %cst_38 = arith.constant dense<0.000000e+00> : vector<1xf32>
      %96 = vector.multi_reduction <add>, %95, %cst_38 [1, 2] : vector<1x1x128xf32> to vector<1xf32>
      %97 = vector.shape_cast %96 : vector<1xf32> to vector<1x1x1xf32>
      %98 = vector.extract %97[0, 0, 0] : f32 from vector<1x1x1xf32>
      %cst_39 = arith.constant 7.500000e-01 : f32
      %99 = vector.broadcast %cst_39 : f32 to vector<1x128xf32>
      %100 = arith.mulf %99, %79 : vector<1x128xf32>
      %101 = arith.mulf %100, %71 : vector<1x128xf32>
      %102 = arith.mulf %101, %71 : vector<1x128xf32>
      %103 = arith.mulf %102, %87 : vector<1x128xf32>
      %104 = vector.shape_cast %103 : vector<1x128xf32> to vector<1x1x128xf32>
      %cst_40 = arith.constant dense<0.000000e+00> : vector<1xf32>
      %105 = vector.multi_reduction <add>, %104, %cst_40 [1, 2] : vector<1x1x128xf32> to vector<1xf32>
      %106 = vector.shape_cast %105 : vector<1xf32> to vector<1x1x1xf32>
      %107 = vector.extract %106[0, 0, 0] : f32 from vector<1x1x1xf32>
      %108 = vector.shape_cast %83 : vector<1x128xf32> to vector<1x1x128xf32>
      %cst_41 = arith.constant dense<0.000000e+00> : vector<1xf32>
      %109 = vector.multi_reduction <add>, %108, %cst_41 [1, 2] : vector<1x1x128xf32> to vector<1xf32>
      %110 = vector.shape_cast %109 : vector<1xf32> to vector<1x1x1xf32>
      %111 = vector.extract %110[0, 0, 0] : f32 from vector<1x1x1xf32>
      %c0_42 = arith.constant 0 : index
      %c0_43 = arith.constant 0 : index
      %112 = vector.load %arg3[%c0_42, %c0_43] : memref<16x128xf32, #tpu.memory_space<vmem>>, vector<16x128xf32>
      %113 = vector.extract_strided_slice %112 {offsets = [0, 0], sizes = [4, 128], strides = [1, 1]} : vector<16x128xf32> to vector<4x128xf32>
      %114 = vector.extract_strided_slice %112 {offsets = [4, 0], sizes = [4, 128], strides = [1, 1]} : vector<16x128xf32> to vector<4x128xf32>
      %115 = vector.extract_strided_slice %112 {offsets = [8, 0], sizes = [4, 128], strides = [1, 1]} : vector<16x128xf32> to vector<4x128xf32>
      %116 = vector.extract_strided_slice %112 {offsets = [12, 0], sizes = [4, 128], strides = [1, 1]} : vector<16x128xf32> to vector<4x128xf32>
      %117 = tpu.iota {dimensions = array<i32: 1>} : vector<1x128xi32>
      %c5_i32 = arith.constant 5 : i32
      %118 = vector.broadcast %c5_i32 : i32 to vector<1x128xi32>
      %119 = arith.cmpi slt, %117, %118 : vector<1x128xi32>
      %120 = arith.extui %119 : vector<1x128xi1> to vector<1x128xi32>
      %121 = arith.sitofp %120 : vector<1x128xi32> to vector<1x128xf32>
      %cst_44 = arith.constant 0.000000e+00 : f32
      %122 = vector.broadcast %cst_44 : f32 to vector<4x128xf32>
      %123 = arith.cmpf one, %116, %122 : vector<4x128xf32>
      %124 = arith.extui %123 : vector<4x128xi1> to vector<4x128xi32>
      %125 = arith.sitofp %124 : vector<4x128xi32> to vector<4x128xf32>
      %cst_45 = arith.constant dense<0xFF800000> : vector<128xf32>
      %126 = vector.multi_reduction <maximumf>, %125, %cst_45 [0] : vector<4x128xf32> to vector<128xf32>
      %127 = vector.shape_cast %126 : vector<128xf32> to vector<1x128xf32>
      %128 = arith.mulf %127, %121 : vector<1x128xf32>
      %129 = arith.subf %113, %115 : vector<4x128xf32>
      %130 = math.absf %129 : vector<4x128xf32>
      %131 = vector.broadcast %121 : vector<1x128xf32> to vector<4x128xf32>
      %132 = arith.mulf %130, %131 : vector<4x128xf32>
      %133 = vector.shape_cast %132 : vector<4x128xf32> to vector<1x4x128xf32>
      %cst_46 = arith.constant dense<0.000000e+00> : vector<1xf32>
      %134 = vector.multi_reduction <add>, %133, %cst_46 [1, 2] : vector<1x4x128xf32> to vector<1xf32>
      %135 = vector.shape_cast %134 : vector<1xf32> to vector<1x1x1xf32>
      %136 = vector.extract %135[0, 0, 0] : f32 from vector<1x1x1xf32>
      %137 = arith.subf %114, %116 : vector<4x128xf32>
      %138 = math.absf %137 : vector<4x128xf32>
      %139 = vector.broadcast %128 : vector<1x128xf32> to vector<4x128xf32>
      %140 = arith.mulf %138, %139 : vector<4x128xf32>
      %141 = vector.shape_cast %140 : vector<4x128xf32> to vector<1x4x128xf32>
      %cst_47 = arith.constant dense<0.000000e+00> : vector<1xf32>
      %142 = vector.multi_reduction <add>, %141, %cst_47 [1, 2] : vector<1x4x128xf32> to vector<1xf32>
      %143 = vector.shape_cast %142 : vector<1xf32> to vector<1x1x1xf32>
      %144 = vector.extract %143[0, 0, 0] : f32 from vector<1x1x1xf32>
      %145 = vector.extract_strided_slice %113 {offsets = [0, 0], sizes = [1, 128], strides = [1, 1]} : vector<4x128xf32> to vector<1x128xf32>
      %146 = vector.extract_strided_slice %113 {offsets = [2, 0], sizes = [1, 128], strides = [1, 1]} : vector<4x128xf32> to vector<1x128xf32>
      %cst_48 = arith.constant 5.000000e-01 : f32
      %147 = vector.broadcast %cst_48 : f32 to vector<1x128xf32>
      %148 = arith.mulf %147, %146 : vector<1x128xf32>
      %149 = arith.subf %145, %148 : vector<1x128xf32>
      %150 = vector.extract_strided_slice %113 {offsets = [1, 0], sizes = [1, 128], strides = [1, 1]} : vector<4x128xf32> to vector<1x128xf32>
      %151 = vector.extract_strided_slice %113 {offsets = [3, 0], sizes = [1, 128], strides = [1, 1]} : vector<4x128xf32> to vector<1x128xf32>
      %cst_49 = arith.constant 5.000000e-01 : f32
      %152 = vector.broadcast %cst_49 : f32 to vector<1x128xf32>
      %153 = arith.mulf %152, %151 : vector<1x128xf32>
      %154 = arith.subf %150, %153 : vector<1x128xf32>
      %155 = vector.extract_strided_slice %113 {offsets = [0, 0], sizes = [1, 128], strides = [1, 1]} : vector<4x128xf32> to vector<1x128xf32>
      %156 = vector.extract_strided_slice %113 {offsets = [2, 0], sizes = [1, 128], strides = [1, 1]} : vector<4x128xf32> to vector<1x128xf32>
      %cst_50 = arith.constant 5.000000e-01 : f32
      %157 = vector.broadcast %cst_50 : f32 to vector<1x128xf32>
      %158 = arith.mulf %157, %156 : vector<1x128xf32>
      %159 = arith.addf %155, %158 : vector<1x128xf32>
      %160 = vector.extract_strided_slice %113 {offsets = [1, 0], sizes = [1, 128], strides = [1, 1]} : vector<4x128xf32> to vector<1x128xf32>
      %161 = vector.extract_strided_slice %113 {offsets = [3, 0], sizes = [1, 128], strides = [1, 1]} : vector<4x128xf32> to vector<1x128xf32>
      %cst_51 = arith.constant 5.000000e-01 : f32
      %162 = vector.broadcast %cst_51 : f32 to vector<1x128xf32>
      %163 = arith.mulf %162, %161 : vector<1x128xf32>
      %164 = arith.addf %160, %163 : vector<1x128xf32>
      %165 = vector.extract_strided_slice %115 {offsets = [0, 0], sizes = [1, 128], strides = [1, 1]} : vector<4x128xf32> to vector<1x128xf32>
      %166 = vector.extract_strided_slice %115 {offsets = [2, 0], sizes = [1, 128], strides = [1, 1]} : vector<4x128xf32> to vector<1x128xf32>
      %cst_52 = arith.constant 5.000000e-01 : f32
      %167 = vector.broadcast %cst_52 : f32 to vector<1x128xf32>
      %168 = arith.mulf %167, %166 : vector<1x128xf32>
      %169 = arith.subf %165, %168 : vector<1x128xf32>
      %170 = vector.extract_strided_slice %115 {offsets = [1, 0], sizes = [1, 128], strides = [1, 1]} : vector<4x128xf32> to vector<1x128xf32>
      %171 = vector.extract_strided_slice %115 {offsets = [3, 0], sizes = [1, 128], strides = [1, 1]} : vector<4x128xf32> to vector<1x128xf32>
      %cst_53 = arith.constant 5.000000e-01 : f32
      %172 = vector.broadcast %cst_53 : f32 to vector<1x128xf32>
      %173 = arith.mulf %172, %171 : vector<1x128xf32>
      %174 = arith.subf %170, %173 : vector<1x128xf32>
      %175 = vector.extract_strided_slice %115 {offsets = [0, 0], sizes = [1, 128], strides = [1, 1]} : vector<4x128xf32> to vector<1x128xf32>
      %176 = vector.extract_strided_slice %115 {offsets = [2, 0], sizes = [1, 128], strides = [1, 1]} : vector<4x128xf32> to vector<1x128xf32>
      %cst_54 = arith.constant 5.000000e-01 : f32
      %177 = vector.broadcast %cst_54 : f32 to vector<1x128xf32>
      %178 = arith.mulf %177, %176 : vector<1x128xf32>
      %179 = arith.addf %175, %178 : vector<1x128xf32>
      %180 = vector.extract_strided_slice %115 {offsets = [1, 0], sizes = [1, 128], strides = [1, 1]} : vector<4x128xf32> to vector<1x128xf32>
      %181 = vector.extract_strided_slice %115 {offsets = [3, 0], sizes = [1, 128], strides = [1, 1]} : vector<4x128xf32> to vector<1x128xf32>
      %cst_55 = arith.constant 5.000000e-01 : f32
      %182 = vector.broadcast %cst_55 : f32 to vector<1x128xf32>
      %183 = arith.mulf %182, %181 : vector<1x128xf32>
      %184 = arith.addf %180, %183 : vector<1x128xf32>
      %185 = arith.subf %159, %149 : vector<1x128xf32>
      %186 = arith.subf %164, %154 : vector<1x128xf32>
      %187 = arith.mulf %185, %186 : vector<1x128xf32>
      %188 = arith.subf %179, %169 : vector<1x128xf32>
      %189 = arith.subf %184, %174 : vector<1x128xf32>
      %190 = arith.mulf %188, %189 : vector<1x128xf32>
      %191 = arith.minimumf %159, %179 : vector<1x128xf32>
      %192 = arith.maximumf %149, %169 : vector<1x128xf32>
      %193 = arith.subf %191, %192 : vector<1x128xf32>
      %cst_56 = arith.constant 0.000000e+00 : f32
      %194 = vector.broadcast %cst_56 : f32 to vector<1x128xf32>
      %195 = arith.maximumf %193, %194 : vector<1x128xf32>
      %196 = arith.minimumf %164, %184 : vector<1x128xf32>
      %197 = arith.maximumf %154, %174 : vector<1x128xf32>
      %198 = arith.subf %196, %197 : vector<1x128xf32>
      %cst_57 = arith.constant 0.000000e+00 : f32
      %199 = vector.broadcast %cst_57 : f32 to vector<1x128xf32>
      %200 = arith.maximumf %198, %199 : vector<1x128xf32>
      %201 = arith.mulf %195, %200 : vector<1x128xf32>
      %202 = arith.addf %187, %190 : vector<1x128xf32>
      %203 = arith.subf %202, %201 : vector<1x128xf32>
      %cst_58 = arith.constant 1.000000e-07 : f32
      %204 = vector.broadcast %cst_58 : f32 to vector<1x128xf32>
      %205 = arith.addf %203, %204 : vector<1x128xf32>
      %206 = arith.divf %201, %205 : vector<1x128xf32>
      %207 = arith.maximumf %159, %179 : vector<1x128xf32>
      %208 = arith.minimumf %149, %169 : vector<1x128xf32>
      %209 = arith.subf %207, %208 : vector<1x128xf32>
      %210 = arith.maximumf %164, %184 : vector<1x128xf32>
      %211 = arith.minimumf %154, %174 : vector<1x128xf32>
      %212 = arith.subf %210, %211 : vector<1x128xf32>
      %cst_59 = arith.constant 0.000000e+00 : f32
      %213 = vector.broadcast %cst_59 : f32 to vector<1x128xf32>
      %214 = arith.maximumf %209, %213 : vector<1x128xf32>
      %cst_60 = arith.constant 0.000000e+00 : f32
      %215 = vector.broadcast %cst_60 : f32 to vector<1x128xf32>
      %216 = arith.maximumf %212, %215 : vector<1x128xf32>
      %217 = arith.mulf %214, %216 : vector<1x128xf32>
      %218 = arith.subf %217, %203 : vector<1x128xf32>
      %cst_61 = arith.constant 1.000000e-07 : f32
      %219 = vector.broadcast %cst_61 : f32 to vector<1x128xf32>
      %220 = arith.addf %217, %219 : vector<1x128xf32>
      %221 = arith.divf %218, %220 : vector<1x128xf32>
      %222 = arith.subf %206, %221 : vector<1x128xf32>
      %cst_62 = arith.constant 1.000000e+00 : f32
      %223 = vector.broadcast %cst_62 : f32 to vector<1x128xf32>
      %224 = arith.subf %223, %222 : vector<1x128xf32>
      %225 = arith.mulf %224, %121 : vector<1x128xf32>
      %226 = vector.shape_cast %225 : vector<1x128xf32> to vector<1x1x128xf32>
      %cst_63 = arith.constant dense<0.000000e+00> : vector<1xf32>
      %227 = vector.multi_reduction <add>, %226, %cst_63 [1, 2] : vector<1x1x128xf32> to vector<1xf32>
      %228 = vector.shape_cast %227 : vector<1xf32> to vector<1x1x1xf32>
      %229 = vector.extract %228[0, 0, 0] : f32 from vector<1x1x1xf32>
      %230 = vector.extract_strided_slice %114 {offsets = [0, 0], sizes = [1, 128], strides = [1, 1]} : vector<4x128xf32> to vector<1x128xf32>
      %231 = vector.extract_strided_slice %114 {offsets = [2, 0], sizes = [1, 128], strides = [1, 1]} : vector<4x128xf32> to vector<1x128xf32>
      %cst_64 = arith.constant 5.000000e-01 : f32
      %232 = vector.broadcast %cst_64 : f32 to vector<1x128xf32>
      %233 = arith.mulf %232, %231 : vector<1x128xf32>
      %234 = arith.subf %230, %233 : vector<1x128xf32>
      %235 = vector.extract_strided_slice %114 {offsets = [1, 0], sizes = [1, 128], strides = [1, 1]} : vector<4x128xf32> to vector<1x128xf32>
      %236 = vector.extract_strided_slice %114 {offsets = [3, 0], sizes = [1, 128], strides = [1, 1]} : vector<4x128xf32> to vector<1x128xf32>
      %cst_65 = arith.constant 5.000000e-01 : f32
      %237 = vector.broadcast %cst_65 : f32 to vector<1x128xf32>
      %238 = arith.mulf %237, %236 : vector<1x128xf32>
      %239 = arith.subf %235, %238 : vector<1x128xf32>
      %240 = vector.extract_strided_slice %114 {offsets = [0, 0], sizes = [1, 128], strides = [1, 1]} : vector<4x128xf32> to vector<1x128xf32>
      %241 = vector.extract_strided_slice %114 {offsets = [2, 0], sizes = [1, 128], strides = [1, 1]} : vector<4x128xf32> to vector<1x128xf32>
      %cst_66 = arith.constant 5.000000e-01 : f32
      %242 = vector.broadcast %cst_66 : f32 to vector<1x128xf32>
      %243 = arith.mulf %242, %241 : vector<1x128xf32>
      %244 = arith.addf %240, %243 : vector<1x128xf32>
      %245 = vector.extract_strided_slice %114 {offsets = [1, 0], sizes = [1, 128], strides = [1, 1]} : vector<4x128xf32> to vector<1x128xf32>
      %246 = vector.extract_strided_slice %114 {offsets = [3, 0], sizes = [1, 128], strides = [1, 1]} : vector<4x128xf32> to vector<1x128xf32>
      %cst_67 = arith.constant 5.000000e-01 : f32
      %247 = vector.broadcast %cst_67 : f32 to vector<1x128xf32>
      %248 = arith.mulf %247, %246 : vector<1x128xf32>
      %249 = arith.addf %245, %248 : vector<1x128xf32>
      %250 = vector.extract_strided_slice %116 {offsets = [0, 0], sizes = [1, 128], strides = [1, 1]} : vector<4x128xf32> to vector<1x128xf32>
      %251 = vector.extract_strided_slice %116 {offsets = [2, 0], sizes = [1, 128], strides = [1, 1]} : vector<4x128xf32> to vector<1x128xf32>
      %cst_68 = arith.constant 5.000000e-01 : f32
      %252 = vector.broadcast %cst_68 : f32 to vector<1x128xf32>
      %253 = arith.mulf %252, %251 : vector<1x128xf32>
      %254 = arith.subf %250, %253 : vector<1x128xf32>
      %255 = vector.extract_strided_slice %116 {offsets = [1, 0], sizes = [1, 128], strides = [1, 1]} : vector<4x128xf32> to vector<1x128xf32>
      %256 = vector.extract_strided_slice %116 {offsets = [3, 0], sizes = [1, 128], strides = [1, 1]} : vector<4x128xf32> to vector<1x128xf32>
      %cst_69 = arith.constant 5.000000e-01 : f32
      %257 = vector.broadcast %cst_69 : f32 to vector<1x128xf32>
      %258 = arith.mulf %257, %256 : vector<1x128xf32>
      %259 = arith.subf %255, %258 : vector<1x128xf32>
      %260 = vector.extract_strided_slice %116 {offsets = [0, 0], sizes = [1, 128], strides = [1, 1]} : vector<4x128xf32> to vector<1x128xf32>
      %261 = vector.extract_strided_slice %116 {offsets = [2, 0], sizes = [1, 128], strides = [1, 1]} : vector<4x128xf32> to vector<1x128xf32>
      %cst_70 = arith.constant 5.000000e-01 : f32
      %262 = vector.broadcast %cst_70 : f32 to vector<1x128xf32>
      %263 = arith.mulf %262, %261 : vector<1x128xf32>
      %264 = arith.addf %260, %263 : vector<1x128xf32>
      %265 = vector.extract_strided_slice %116 {offsets = [1, 0], sizes = [1, 128], strides = [1, 1]} : vector<4x128xf32> to vector<1x128xf32>
      %266 = vector.extract_strided_slice %116 {offsets = [3, 0], sizes = [1, 128], strides = [1, 1]} : vector<4x128xf32> to vector<1x128xf32>
      %cst_71 = arith.constant 5.000000e-01 : f32
      %267 = vector.broadcast %cst_71 : f32 to vector<1x128xf32>
      %268 = arith.mulf %267, %266 : vector<1x128xf32>
      %269 = arith.addf %265, %268 : vector<1x128xf32>
      %270 = arith.subf %244, %234 : vector<1x128xf32>
      %271 = arith.subf %249, %239 : vector<1x128xf32>
      %272 = arith.mulf %270, %271 : vector<1x128xf32>
      %273 = arith.subf %264, %254 : vector<1x128xf32>
      %274 = arith.subf %269, %259 : vector<1x128xf32>
      %275 = arith.mulf %273, %274 : vector<1x128xf32>
      %276 = arith.minimumf %244, %264 : vector<1x128xf32>
      %277 = arith.maximumf %234, %254 : vector<1x128xf32>
      %278 = arith.subf %276, %277 : vector<1x128xf32>
      %cst_72 = arith.constant 0.000000e+00 : f32
      %279 = vector.broadcast %cst_72 : f32 to vector<1x128xf32>
      %280 = arith.maximumf %278, %279 : vector<1x128xf32>
      %281 = arith.minimumf %249, %269 : vector<1x128xf32>
      %282 = arith.maximumf %239, %259 : vector<1x128xf32>
      %283 = arith.subf %281, %282 : vector<1x128xf32>
      %cst_73 = arith.constant 0.000000e+00 : f32
      %284 = vector.broadcast %cst_73 : f32 to vector<1x128xf32>
      %285 = arith.maximumf %283, %284 : vector<1x128xf32>
      %286 = arith.mulf %280, %285 : vector<1x128xf32>
      %287 = arith.addf %272, %275 : vector<1x128xf32>
      %288 = arith.subf %287, %286 : vector<1x128xf32>
      %cst_74 = arith.constant 1.000000e-07 : f32
      %289 = vector.broadcast %cst_74 : f32 to vector<1x128xf32>
      %290 = arith.addf %288, %289 : vector<1x128xf32>
      %291 = arith.divf %286, %290 : vector<1x128xf32>
      %292 = arith.maximumf %244, %264 : vector<1x128xf32>
      %293 = arith.minimumf %234, %254 : vector<1x128xf32>
      %294 = arith.subf %292, %293 : vector<1x128xf32>
      %295 = arith.maximumf %249, %269 : vector<1x128xf32>
      %296 = arith.minimumf %239, %259 : vector<1x128xf32>
      %297 = arith.subf %295, %296 : vector<1x128xf32>
      %cst_75 = arith.constant 0.000000e+00 : f32
      %298 = vector.broadcast %cst_75 : f32 to vector<1x128xf32>
      %299 = arith.maximumf %294, %298 : vector<1x128xf32>
      %cst_76 = arith.constant 0.000000e+00 : f32
      %300 = vector.broadcast %cst_76 : f32 to vector<1x128xf32>
      %301 = arith.maximumf %297, %300 : vector<1x128xf32>
      %302 = arith.mulf %299, %301 : vector<1x128xf32>
      %303 = arith.subf %302, %288 : vector<1x128xf32>
      %cst_77 = arith.constant 1.000000e-07 : f32
      %304 = vector.broadcast %cst_77 : f32 to vector<1x128xf32>
      %305 = arith.addf %302, %304 : vector<1x128xf32>
      %306 = arith.divf %303, %305 : vector<1x128xf32>
      %307 = arith.subf %291, %306 : vector<1x128xf32>
      %cst_78 = arith.constant 1.000000e+00 : f32
      %308 = vector.broadcast %cst_78 : f32 to vector<1x128xf32>
      %309 = arith.subf %308, %307 : vector<1x128xf32>
      %310 = arith.mulf %309, %128 : vector<1x128xf32>
      %311 = vector.shape_cast %310 : vector<1x128xf32> to vector<1x1x128xf32>
      %cst_79 = arith.constant dense<0.000000e+00> : vector<1xf32>
      %312 = vector.multi_reduction <add>, %311, %cst_79 [1, 2] : vector<1x1x128xf32> to vector<1xf32>
      %313 = vector.shape_cast %312 : vector<1xf32> to vector<1x1x1xf32>
      %314 = vector.extract %313[0, 0, 0] : f32 from vector<1x1x1xf32>
      %315 = vector.shape_cast %128 : vector<1x128xf32> to vector<1x1x128xf32>
      %cst_80 = arith.constant dense<0.000000e+00> : vector<1xf32>
      %316 = vector.multi_reduction <add>, %315, %cst_80 [1, 2] : vector<1x1x128xf32> to vector<1xf32>
      %317 = vector.shape_cast %316 : vector<1xf32> to vector<1x1x1xf32>
      %318 = vector.extract %317[0, 0, 0] : f32 from vector<1x1x1xf32>
      %cst_81 = arith.constant 0.000000e+00 : f32
      %319 = vector.broadcast %cst_81 : f32 to vector<1x128xf32>
      %c0_i32_82 = arith.constant 0 : i32
      %320 = vector.broadcast %c0_i32_82 : i32 to vector<1x128xi32>
      %321 = arith.cmpi eq, %0, %320 : vector<1x128xi32>
      %cst_83 = arith.constant 0.000000e+00 : f32
      %322 = vector.broadcast %98 : f32 to vector<1x128xf32>
      %323 = vector.broadcast %cst_83 : f32 to vector<1x128xf32>
      %324 = arith.select %321, %322, %323 : vector<1x128xi1>, vector<1x128xf32>
      %325 = arith.addf %319, %324 : vector<1x128xf32>
      %c1_i32 = arith.constant 1 : i32
      %326 = vector.broadcast %c1_i32 : i32 to vector<1x128xi32>
      %327 = arith.cmpi eq, %0, %326 : vector<1x128xi32>
      %cst_84 = arith.constant 0.000000e+00 : f32
      %328 = vector.broadcast %107 : f32 to vector<1x128xf32>
      %329 = vector.broadcast %cst_84 : f32 to vector<1x128xf32>
      %330 = arith.select %327, %328, %329 : vector<1x128xi1>, vector<1x128xf32>
      %331 = arith.addf %325, %330 : vector<1x128xf32>
      %c2_i32 = arith.constant 2 : i32
      %332 = vector.broadcast %c2_i32 : i32 to vector<1x128xi32>
      %333 = arith.cmpi eq, %0, %332 : vector<1x128xi32>
      %cst_85 = arith.constant 0.000000e+00 : f32
      %334 = vector.broadcast %111 : f32 to vector<1x128xf32>
      %335 = vector.broadcast %cst_85 : f32 to vector<1x128xf32>
      %336 = arith.select %333, %334, %335 : vector<1x128xi1>, vector<1x128xf32>
      %337 = arith.addf %331, %336 : vector<1x128xf32>
      %c3_i32 = arith.constant 3 : i32
      %338 = vector.broadcast %c3_i32 : i32 to vector<1x128xi32>
      %339 = arith.cmpi eq, %0, %338 : vector<1x128xi32>
      %cst_86 = arith.constant 0.000000e+00 : f32
      %340 = vector.broadcast %136 : f32 to vector<1x128xf32>
      %341 = vector.broadcast %cst_86 : f32 to vector<1x128xf32>
      %342 = arith.select %339, %340, %341 : vector<1x128xi1>, vector<1x128xf32>
      %343 = arith.addf %337, %342 : vector<1x128xf32>
      %c4_i32 = arith.constant 4 : i32
      %344 = vector.broadcast %c4_i32 : i32 to vector<1x128xi32>
      %345 = arith.cmpi eq, %0, %344 : vector<1x128xi32>
      %cst_87 = arith.constant 0.000000e+00 : f32
      %346 = vector.broadcast %144 : f32 to vector<1x128xf32>
      %347 = vector.broadcast %cst_87 : f32 to vector<1x128xf32>
      %348 = arith.select %345, %346, %347 : vector<1x128xi1>, vector<1x128xf32>
      %349 = arith.addf %343, %348 : vector<1x128xf32>
      %c5_i32_88 = arith.constant 5 : i32
      %350 = vector.broadcast %c5_i32_88 : i32 to vector<1x128xi32>
      %351 = arith.cmpi eq, %0, %350 : vector<1x128xi32>
      %cst_89 = arith.constant 0.000000e+00 : f32
      %352 = vector.broadcast %229 : f32 to vector<1x128xf32>
      %353 = vector.broadcast %cst_89 : f32 to vector<1x128xf32>
      %354 = arith.select %351, %352, %353 : vector<1x128xi1>, vector<1x128xf32>
      %355 = arith.addf %349, %354 : vector<1x128xf32>
      %c6_i32 = arith.constant 6 : i32
      %356 = vector.broadcast %c6_i32 : i32 to vector<1x128xi32>
      %357 = arith.cmpi eq, %0, %356 : vector<1x128xi32>
      %cst_90 = arith.constant 0.000000e+00 : f32
      %358 = vector.broadcast %314 : f32 to vector<1x128xf32>
      %359 = vector.broadcast %cst_90 : f32 to vector<1x128xf32>
      %360 = arith.select %357, %358, %359 : vector<1x128xi1>, vector<1x128xf32>
      %361 = arith.addf %355, %360 : vector<1x128xf32>
      %c7_i32 = arith.constant 7 : i32
      %362 = vector.broadcast %c7_i32 : i32 to vector<1x128xi32>
      %363 = arith.cmpi eq, %0, %362 : vector<1x128xi32>
      %cst_91 = arith.constant 0.000000e+00 : f32
      %364 = vector.broadcast %318 : f32 to vector<1x128xf32>
      %365 = vector.broadcast %cst_91 : f32 to vector<1x128xf32>
      %366 = arith.select %363, %364, %365 : vector<1x128xi1>, vector<1x128xf32>
      %367 = arith.addf %361, %366 : vector<1x128xf32>
      %c8_i32 = arith.constant 8 : i32
      %368 = vector.broadcast %c8_i32 : i32 to vector<1x128xi32>
      %369 = arith.cmpi eq, %0, %368 : vector<1x128xi32>
      %cst_92 = arith.constant 0.000000e+00 : f32
      %370 = vector.broadcast %50 : f32 to vector<1x128xf32>
      %371 = vector.broadcast %cst_92 : f32 to vector<1x128xf32>
      %372 = arith.select %369, %370, %371 : vector<1x128xi1>, vector<1x128xf32>
      %373 = arith.addf %367, %372 : vector<1x128xf32>
      %c0_93 = arith.constant 0 : index
      %c0_94 = arith.constant 0 : index
      %374 = vector.load %arg6[%c0_93, %c0_94] : memref<1x128xf32, #tpu.memory_space<vmem>>, vector<1x128xf32>
      tpu.vector_store %arg6[%c0_93, %c0_94], %373 {strides = array<i32>} : memref<1x128xf32, #tpu.memory_space<vmem>>, vector<1x128xf32>,
    } else {
    }
    %c0_i32_21 = arith.constant 0 : i32
    %54 = arith.cmpi ne, %arg0, %c0_i32_21 : i32
    %55 = arith.extui %54 : i1 to i32
    %c0_i32_22 = arith.constant 0 : i32
    %56 = arith.cmpi ne, %55, %c0_i32_22 : i32
    scf.if %56 {
      %c0_23 = arith.constant 0 : index
      %c0_24 = arith.constant 0 : index
      %57 = vector.load %arg6[%c0_23, %c0_24] : memref<1x128xf32, #tpu.memory_space<vmem>>, vector<1x128xf32>
      %c8_i32 = arith.constant 8 : i32
      %58 = vector.broadcast %c8_i32 : i32 to vector<1x128xi32>
      %59 = arith.cmpi eq, %0, %58 : vector<1x128xi32>
      %cst_25 = arith.constant 0.000000e+00 : f32
      %60 = vector.broadcast %50 : f32 to vector<1x128xf32>
      %61 = vector.broadcast %cst_25 : f32 to vector<1x128xf32>
      %62 = arith.select %59, %60, %61 : vector<1x128xi1>, vector<1x128xf32>
      %63 = arith.addf %57, %62 : vector<1x128xf32>
      %c0_26 = arith.constant 0 : index
      %c0_27 = arith.constant 0 : index
      %64 = vector.load %arg6[%c0_26, %c0_27] : memref<1x128xf32, #tpu.memory_space<vmem>>, vector<1x128xf32>
      tpu.vector_store %arg6[%c0_26, %c0_27], %63 {strides = array<i32>} : memref<1x128xf32, #tpu.memory_space<vmem>>, vector<1x128xf32>,
    } else {
    }
    return
  }
  func.func @transform_0(%arg0: i32) -> (i32, i32) {
    %c0_i32 = arith.constant 0 : i32
    %c0_i32_0 = arith.constant 0 : i32
    %c0_i32_1 = arith.constant 0 : i32
    return %c0_i32, %c0_i32_0 : i32, i32
  }
  func.func @transform_1(%arg0: i32) -> (i32, i32) {
    %c0_i32 = arith.constant 0 : i32
    %c0_i32_0 = arith.constant 0 : i32
    %c0_i32_1 = arith.constant 0 : i32
    return %c0_i32, %c0_i32_0 : i32, i32
  }
  func.func @transform_2(%arg0: i32) -> (i32, i32) {
    %c0_i32 = arith.constant 0 : i32
    %c0_i32_0 = arith.constant 0 : i32
    %c0_i32_1 = arith.constant 0 : i32
    return %c0_i32, %c0_i32_0 : i32, i32
  }
  func.func @transform_3(%arg0: i32) -> (i32, i32) {
    %c0_i32 = arith.constant 0 : i32
    %c0_i32_0 = arith.constant 0 : i32
    return %arg0, %c0_i32 : i32, i32
  }
  func.func @transform_4(%arg0: i32) -> (i32, i32) {
    %c0_i32 = arith.constant 0 : i32
    %c0_i32_0 = arith.constant 0 : i32
    return %arg0, %c0_i32 : i32, i32
  }
  func.func @transform_5(%arg0: i32) -> (i32, i32) {
    %c0_i32 = arith.constant 0 : i32
    %c0_i32_0 = arith.constant 0 : i32
    %c0_i32_1 = arith.constant 0 : i32
    return %c0_i32, %c0_i32_0 : i32, i32
  }
}

</mosaic_0001>

<bundles_post_ra>
// kernel: tpu_custom_call.1
= control target key start
LH: loop header
LB: loop body
LE: loop exit
PB: predicated region body
PF: predicated region fallthrough
CT: control target
= control target key end

     0   :  { %10 = vsyncpa [#allocation3], 0  ;;  %s1333_s0 = inlined_call_operand.hbm [shape: f32[1,128], index: 0, kind: input, shape index: {}]   ;;  %s1334_s1 = inlined_call_operand.vmem [shape: f32[1,128], index: 1, kind: input, shape index: {}]   ;;  %s1335_s2 = inlined_call_operand.hbm [shape: f32[16,128], index: 2, kind: input, shape index: {}]   ;;  %s1336_s3 = inlined_call_operand.hbm [shape: f32[16,128], index: 3, kind: input, shape index: {}]   ;;  %s1337_s4 = inlined_call_operand.hbm [shape: f32[16,128], index: 4, kind: input, shape index: {}]   ;;  %s1338_s5 = inlined_call_operand.hbm [shape: f32[1,128], index: 5, kind: output, shape index: {}]  }
   0x1   :  { %11 = vsyncpa [#allocation6], 0 }
   0x2   :  { %12 = vsyncpa [#allocation4], 0  ;;  %s1033_s18 = smov 0   ;;  %s1035_s19 = smov 0  }
   0x3   :  { %s1037_s20 = smov 0   ;;  %s1039_s21 = smov 0  }
   0x4 LB: > { %s1052_s22 = sadd.s32 4294967295, %s993_s21   ;;  %p101_p0 = scmp.ne.s32.totalorder %s985_s19, %s981_s18  ;;  %s993_s21 = sphi %s1039_s21, %s1370_s21   ;;  %s989_s20 = sphi %s1037_s20, %s1369_s20   ;;  %s985_s19 = sphi %s1035_s19, %s1368_s19   ;;  %s981_s18 = sphi %s1033_s18, %s1367_s18  }
   0x5   : > { %p1339_p1 = scmp.eq.s32.totalorder %s1052_s22, 0  ;;  %p673_p2 = scmp.ge.s32.totalorder %s993_s21, 1 }
   0x6   : > { %p159_p3 = scmp.lt.s32.totalorder %s993_s21, 3  ;;  %s995_s25 = smov [#allocation2]  }
   0x7   : > { %p1061_p5 = por %p1339_p1, %p101_p0  ;;  %s172_s26 = sshll.u32 %s995_s25, 4  ;;  %s173_s26 = int_to_ptr.vmem [resolvable:$true] %s172_s26 }
   0x8   : > { %p1065_p6 = pnand %p673_p2, %p159_p3  ;;  %s1072_s27 = sadd.s32 1, %s993_s21  }
   0x9   : > { %s1346_s23 = scalar_select %p1061_p5, 1, 0 }
   0xa   : > { %s1347_s24 = scalar_select %p1065_p6, 1, 0 }
   0xb   : > { %p730_p7 = pneg %p1065_p6  ;;  %s85_s29 = ssub.s32 %s993_s21, %s1072_s27 }
   0xc   : > { %p1082_p9 = scmp.eq.s32.totalorder %s85_s29, 0  ;;  %s88_s6 = sadd.s32 1, %s989_s20 }
   0xd   : > { %p1076_p8 = pnand %p730_p7, %p1339_p1  ;;  %s805_s9 = scalar_lea.hbm %s1333_s0, 16 }
   0xe   : > { %s1349_s30 = scalar_select %p1082_p9, 1, 0 }
   0xf   : > { %p806_p11 = scmp.ne.s32.totalorder %s1333_s0, %s805_s9  ;;  %p1342_p12 = pneg %p1076_p8 }
  0x10   : > { %p812_p2 = scmp.lt.u32.totalorder %s805_s9, %s1333_s0 }
  0x11   : > { %p808_p13 = pnand %p1342_p12, %p806_p11 }
  0x13   : > { %p809_p0 = pneg %p808_p13 }
  0x15   : > { %p814_p3 = pnand %p812_p2, %p809_p0 }
  0x17   : > { %817 = shalt.err (!%p814_p3)
}
  0x18   : > { %s818_s14 = scalar_lea.vmem %s173_s26, 16  ;;  %s825_s15 = scalar_lea.vmem %s173_s26, 32 }
  0x19   : > { %p819_p7 = scmp.ne.s32.totalorder %s173_s26, %s818_s14  ;;  %p826_p10 = scmp.lt.s32.totalorder %s173_s26, %s173_s26 }
  0x1a   : > { %p827_p5 = scmp.lt.s32.totalorder %s825_s15, %s818_s14 }
  0x1b   : > { %p821_p4 = pnand %p819_p7, %p1342_p12 }
  0x1c   : > { %p828_p6 = por %p827_p5, %p826_p10 }
  0x1d   : > { %p822_p1 = pneg %p821_p4 }
  0x1f   : > { %p829_p9 = pnand %p828_p6, %p822_p1 }
  0x21   : > { %832 = shalt.err (!%p829_p9)
}
  0x22   : > { %733 = dma.hbm_to_vmem [thread:$0]  (!%p1076_p8), %s1333_s0, 16, %s173_s26, [#allocation3]  }
  0x23   : > { %p1350_p4 = scmp.ne.s32.totalorder %s1349_s30, 0  ;;  %p96_p1 = scmp.eq.s32.totalorder %s993_s21, 0 }
  0x24   : > { %p746_p5 = scmp.lt.s32.totalorder %s993_s21, 2  ;;  %s199_s25 = sand.u32 1, %s993_s21  }
  0x25   : > { %s1114_s18 = scalar_select %p1350_p4, %s989_s20, %s88_s6  }
  0x26   : > { %s201_s29 = sand.u32 1, %s989_s20   ;;  %p1351_p6 = scmp.ne.s32.totalorder %s989_s20, %s985_s19 }
  0x27   : > { %s1123_s7 = sshll.u32 %s201_s29, 3  ;;  %s678_s8 = sshll.u32 %s993_s21, 7 }
  0x28   : > { %p97_p9 = por %p96_p1, %p1351_p6  ;;  %s1131_s11 = scalar_lea.hbm %s1336_s3, %s678_s8 }
  0x29   : > { %s203_s26 = scalar_lea.vmem [#allocation7], %s1123_s7  ;;  %s996_s12 = smov [#allocation5]  }
  0x2a   : > { %s210_s30 = sshll.u32 %s203_s26, 4  ;;  %p1134_p10 = pnand %p746_p5, %p97_p9  ;;  %s1138_s30 = int_to_ptr.vmem [resolvable:$true] %s210_s30 }
  0x2b   : > { %s1140_s13 = sshll.u32 %s996_s12, 4  ;;  %s1142_s14 = scalar_lea.sflag [#allocation3], %s199_s25  ;;  %s186_s13 = int_to_ptr.vmem [resolvable:$true] %s1140_s13 }
  0x2c   : > { %s1352_s6 = scalar_select %p1134_p10, 1, 0 }
  0x2d   : > { %s833_s15 = scalar_lea.hbm %s1131_s11, 128  ;;  %p1343_p13 = pneg %p1134_p10 }
  0x2e   : > { %p834_p11 = scmp.ne.s32.totalorder %s1131_s11, %s833_s15  ;;  %s838_s29 = scalar_lea.hbm %s1336_s3, 256 }
  0x2f   : > { %p839_p3 = scmp.lt.u32.totalorder %s1131_s11, %s1336_s3  ;;  %p840_p7 = scmp.lt.u32.totalorder %s838_s29, %s833_s15 }
  0x30   : > { %p836_p0 = pnand %p1343_p13, %p834_p11  ;;  %p842_p1 = scmp.lt.u32.totalorder %s833_s15, %s1131_s11 }
  0x31   : > { %p841_p4 = por %p840_p7, %p839_p3 }
  0x32   : > { %p837_p2 = pneg %p836_p0 }
  0x33   : > { %p843_p5 = por %p842_p1, %p841_p4 }
  0x35   : > { %p844_p6 = pnand %p843_p5, %p837_p2 }
  0x37   : > { %847 = shalt.err (!%p844_p6)
}
  0x38   : > { %s848_s25 = scalar_lea.vmem %s1138_s30, 128  ;;  %s997_s26 = smov [#allocation7]  }
  0x39   : > { %p849_p9 = scmp.ne.s32.totalorder %s1138_s30, %s848_s25  ;;  %s853_s12 = sshll.u32 %s997_s26, 4  ;;  %s854_s12 = int_to_ptr.vmem [resolvable:$false] %s853_s12 }
  0x3a   : > { %s855_s16 = scalar_lea.vmem %s854_s12, 256  ;;  %p856_p12 = scmp.lt.s32.totalorder %s1138_s30, %s854_s12 }
  0x3b   : > { %p851_p11 = pnand %p849_p9, %p1343_p13  ;;  %p857_p3 = scmp.lt.s32.totalorder %s855_s16, %s848_s25 }
  0x3d   : > { %p852_p0 = pneg %p851_p11  ;;  %p858_p7 = por %p857_p3, %p856_p12 }
  0x3f   : > { %p859_p4 = pnand %p858_p7, %p852_p0 }
  0x41   : > { %862 = shalt.err (!%p859_p4)
}
  0x42   : > { %740 = dma.hbm_to_vmem [thread:$0]  (!%p1134_p10), %s1131_s11, 128, %s1138_s30, %s1142_s14  }
  0x43   : > { %s863_s29 = scalar_lea.hbm %s1335_s2, 256  ;;  %p1353_p12 = pneg %p1076_p8 }
  0x44   : > { %p864_p2 = scmp.ne.s32.totalorder %s1335_s2, %s863_s29  ;;  %p870_p6 = scmp.lt.u32.totalorder %s863_s29, %s1335_s2 }
  0x46   : > { %p866_p1 = pnand %p864_p2, %p1353_p12 }
  0x48   : > { %p867_p5 = pneg %p866_p1 }
  0x4a   : > { %p872_p9 = pnand %p870_p6, %p867_p5 }
  0x4c   : > { %875 = shalt.err (!%p872_p9)
}
  0x4d   : > { %s876_s11 = scalar_lea.vmem %s186_s13, 256  ;;  %p1354_p0 = pmov %p1353_p12 }
  0x4e   : > { %p877_p11 = scmp.ne.s32.totalorder %s186_s13, %s876_s11  ;;  %p884_p4 = scmp.lt.s32.totalorder %s186_s13, %s186_s13 }
  0x4f   : > { %p885_p13 = scmp.lt.s32.totalorder %s876_s11, %s876_s11 }
  0x50   : > { %p879_p3 = pnand %p877_p11, %p1354_p0 }
  0x51   : > { %p886_p10 = por %p885_p13, %p884_p4 }
  0x52   : > { %p880_p7 = pneg %p879_p3 }
  0x54   : > { %p887_p2 = pnand %p886_p10, %p880_p7 }
  0x56   : > { %890 = shalt.err (!%p887_p2)
}
  0x57   : > { %s998_s30 = smov 128   ;;  %s999_s12 = smov 8  }
  0x58   : > { %736 = dma.hbm_to_vmem [thread:$0]  (!%p1076_p8), %s1335_s2, 256, %s186_s13, [#allocation6], %s998_s30, %s998_s30, %s999_s12  }
  0x59   : > { %s1196_s9 = scalar_lea.hbm %s1337_s4, %s678_s8  ;;  %s221_s10 = scalar_lea.vmem [#allocation8], %s1123_s7 }
  0x5a   : > { %s228_s25 = sshll.u32 %s221_s10, 4  ;;  %s891_s26 = scalar_lea.hbm %s1196_s9, 128  ;;  %s229_s25 = int_to_ptr.vmem [resolvable:$true] %s228_s25 }
  0x5b   : > { %p892_p10 = scmp.ne.s32.totalorder %s1196_s9, %s891_s26  ;;  %p1355_p13 = scmp.ne.s32.totalorder %s1352_s6, 0 }
  0x5c   : > { %s896_s13 = scalar_lea.hbm %s1337_s4, 256  ;;  %p897_p8 = scmp.lt.u32.totalorder %s1196_s9, %s1337_s4 }
  0x5d   : > { %p1356_p12 = pneg %p1355_p13  ;;  %p898_p6 = scmp.lt.u32.totalorder %s896_s13, %s891_s26 }
  0x5e   : > { %p900_p11 = scmp.lt.u32.totalorder %s891_s26, %s1196_s9 }
  0x5f   : > { %p894_p1 = pnand %p892_p10, %p1356_p12  ;;  %p899_p9 = por %p898_p6, %p897_p8 }
  0x61   : > { %p895_p5 = pneg %p894_p1  ;;  %p901_p0 = por %p900_p11, %p899_p9 }
  0x63   : > { %p902_p3 = pnand %p901_p0, %p895_p5 }
  0x65   : > { %905 = shalt.err (!%p902_p3)
}
  0x66   : > { %s906_s7 = scalar_lea.vmem %s229_s25, 128  ;;  %p1357_p4 = pmov %p1356_p12 }
  0x67   : > { %p907_p7 = scmp.ne.s32.totalorder %s229_s25, %s906_s7  ;;  %s1000_s30 = smov [#allocation8]  }
  0x68   : > { %s911_s12 = sshll.u32 %s1000_s30, 4  ;;  %s912_s12 = int_to_ptr.vmem [resolvable:$false] %s911_s12 }
  0x69   : > { %p909_p2 = pnand %p907_p7, %p1357_p4  ;;  %s913_s16 = scalar_lea.vmem %s912_s12, 256 }
  0x6a   : > { %p914_p12 = scmp.lt.s32.totalorder %s229_s25, %s912_s12  ;;  %p915_p1 = scmp.lt.s32.totalorder %s913_s16, %s906_s7 }
  0x6b   : > { %p910_p10 = pneg %p909_p2 }
  0x6c   : > { %p916_p6 = por %p915_p1, %p914_p12 }
  0x6e   : > { %p917_p8 = pnand %p916_p6, %p910_p10 }
  0x70   : > { %920 = shalt.err (!%p917_p8)
}
  0x71   : > { %743 = dma.hbm_to_vmem [thread:$0]  (!%p1355_p13), %s1196_s9, 128, %s229_s25, %s1142_s14  }
  0x72   : > { %p1358_p5 = scmp.ne.s32.totalorder %s1347_s24, 0 }
  0x73   : > { %p1359_p9 = scmp.eq.s32.totalorder (!%p1358_p5), %s1052_s22, 0 }
  0x74   : > { %237 = sbr.rel (%p1358_p5) target bundleno = 624 (0x270), region = 40 }
  0x7b   : > { %964 = dma.done.wait (%p1359_p9), [#allocation3], 16   ;;  %p1360_p11 = pmov %p1359_p9 }
  0x7c   : > { %p1361_p0 = pmov %p1359_p9 }
  0x7d   : > { %966 = vsyncadd (%p1360_p11), [#allocation3], 4294967280 }
  0x7e   : > { %968 = dma.done.wait (%p1361_p0), [#allocation6], 256   ;;  %p1362_p3 = pmov %p1361_p0 }
  0x7f   : > { %s247_s6 = sand.u32 1, %s1052_s22   ;;  %s249_s14 = sand.u32 1, %s985_s19  }
  0x80   : > { %970 = vsyncadd (%p1362_p3), [#allocation6], 4294967040  ;;  %s684_s15 = sshll.u32 %s249_s14, 3  ;;  %s248_s24 = scalar_lea.sflag [#allocation3], %s247_s6 }
  0x81   : > { %s251_s17 = scalar_lea.vmem [#allocation7], %s684_s15  ;;  %p1363_p13 = scmp.ne.s32.totalorder %s1346_s23, 0 }
  0x83   : > { %972 = dma.done.wait (%p1363_p13), %s248_s24, 256  }
  0x84   : > { %974 = vsyncadd (%p1363_p13), %s248_s24, 4294967040  ;;  %v287_v0 = vlaneseq  ;;  %v289_v2 = vld [vmem:[%s251_s17] sm:$0xff]  ;;  %s260_s29 = scalar_lea.vmem [#allocation8], %s684_s15  ;;  %p1364_p7 = scmp.ne.s32.totalorder %s1052_s22, 0 }
  0x85   : > { %v291_v3 = vand.u32 2147483647, %v289_v2  ;;  %vm298_vm0 = vcmp.ge.f32.partialorder %v289_v2, 0.0  ;;  %v290_v13 = vld [vmem:[%s260_s29] sm:$0xff]  ;;  %v1245_v38 = vld [vmem:[%s1334_s1] sm:$0x1] (!%p1364_p7) }
  0x86   : > { %v1235_v1 = vand.u32 127, %v287_v0  ;;  %v307_v16 = vsub.f32 1.0, %v290_v13  ;;  %vm316_vm1 = vcmp.gt.f32.partialorder %v290_v13, 0.5  ;;  %vm365_vm2 = vcmask (!%p1364_p7), 1040384   ;;  %v1248_v39 = vld [vmem:[#allocation2] sm:$0x1] (!%p1364_p7) }
  0x87   : > { %v292_v4 = vsub.f32 0.0, %v291_v3  ;;  %vm354_vm3 = vcmp.eq.f32.partialorder (!%p1364_p7), %v1245_v38, 1.0  ;;  %v1001_v40 = vmov (!%p1364_p7), 0.0   ;;  %v337_v42 = vand.u32 (!%p1364_p7), 2147483647, %v1248_v39  ;;  %v400_v43 = vld [vmem:[#allocation5] sm:$0xff] (!%p1364_p7) }
  0x88   : > { %v1251_v41 = vsel (!%p1364_p7), %vm354_vm3, 1.0, %v1001_v40  ;;  %v401_v45 = vld [vmem:[#allocation5 + $0x8] sm:$0xff] (!%p1364_p7)  ;;  %vm402_vm4 = vcmp.lt.s32.totalorder (!%p1364_p7), %v1235_v1, 5  ;;  %v445_v49 = vmul.f32 (!%p1364_p7), 0.5, %v400_v43  ;;  %vm408_vm6 = vcmask (!%p1364_p7), 1047556  }
  0x89   : > { %v293_v5 = vmul.f32 1.442695, %v292_v4  ;;  %v390_v44 = vsel (!%p1364_p7), %vm365_vm2, %v1251_v41, 0.0  ;;  %v338_v46 = vsub.f32 (!%p1364_p7), 0.0, %v337_v42  ;;  %v417_v47 = vsub.f32 (!%p1364_p7), %v400_v43, %v401_v45 }
  0x8a   : > { %391 = vadd.xlane.f32.xlu1 (!%p1364_p7), %v390_v44  ;;  %vm405_vm5 = vcmp.ne.f32.partialorder (!%p1364_p7), %v401_v45, 0.0  ;;  %v1258_v48 = vsel (!%p1364_p7), %vm402_vm4, 1.0, %v1001_v40  ;;  %v451_v52 = vmul.f32 (!%p1364_p7), 0.5, %v401_v45  ;;  %vm420_vm7 = vcmask (!%p1364_p7), 1043456  }
  0x8b   : > { %789 = vpow2.f32 %v293_v5  ;;  %v339_v50 = vmul.f32 (!%p1364_p7), 1.442695, %v338_v46  ;;  %v1260_v51 = vand.u32 (!%p1364_p7), 2147483647, %v417_v47  ;;  %v447_v53 = vrot.slane (!%p1364_p7), %v445_v49, 2 }
  0x8c   : > { %v690_v54 = vsel (!%p1364_p7), %vm405_vm5, 1.0, %v1001_v40  ;;  %v453_v56 = vrot.slane (!%p1364_p7), %v451_v52, 2  ;;  %vm346_vm8 = vcmp.ge.f32.partialorder (!%p1364_p7), %v1248_v39, 0.0  ;;  %vm357_vm9 = vcmp.lt.f32.partialorder (!%p1364_p7), %v1245_v38, 1.0 }
  0x8d   : > { %v419_v55 = vmul.f32 (!%p1364_p7), %v1258_v48, %v1260_v51  ;;  %v449_v57 = vsub.f32 (!%p1364_p7), %v400_v43, %v447_v53  ;;  %v450_v58 = vadd.f32 (!%p1364_p7), %v447_v53, %v400_v43  ;;  %v409_v62 = vsel (!%p1364_p7), %vm408_vm6, %v690_v54, -inf }
  0x8e   : > { %v455_v60 = vsub.f32 (!%p1364_p7), %v401_v45, %v453_v56  ;;  %v456_v61 = vadd.f32 (!%p1364_p7), %v453_v56, %v401_v45  ;;  %vm529_vm10 = vcmp.eq.s32.totalorder (!%p1364_p7), %v1235_v1, 0  ;;  %vm533_vm11 = vcmp.eq.s32.totalorder (!%p1364_p7), %v1235_v1, 1 }
  0x8f   : > { %v421_v59 = vsel (!%p1364_p7), %vm420_vm7, %v419_v55, 0.0  ;;  %v457_v63 = vsub.f32 (!%p1364_p7), %v450_v58, %v449_v57  ;;  %vm537_vm12 = vcmp.eq.s32.totalorder (!%p1364_p7), %v1235_v1, 2  ;;  %vm541_vm13 = vcmp.eq.s32.totalorder (!%p1364_p7), %v1235_v1, 3 }
  0x90   : > { %422 = vadd.xlane.f32.xlu1 (!%p1364_p7), %v421_v59  ;;  %v462_v0 = vsub.f32 (!%p1364_p7), %v456_v61, %v455_v60  ;;  %v467_v2 = vmin.f32 (!%p1364_p7), %v450_v58, %v456_v61  ;;  %v468_v3 = vmax.f32 (!%p1364_p7), %v449_v57, %v455_v60  ;;  %v480_v5 = vmax.f32 (!%p1364_p7), %v450_v58, %v456_v61 }
  0x91   : > { %v459_v4 = vrot.slane (!%p1364_p7), %v457_v63, 1  ;;  %vm545_vm14 = vcmp.eq.s32.totalorder (!%p1364_p7), %v1235_v1, 4  ;;  %vm549_vm15 = vcmp.eq.s32.totalorder (!%p1364_p7), %v1235_v1, 5 }
  0x95   : > { %v790_v6 = vpop.eup %789 }
  0x96   : > { %v295_v7 = vadd.f32 1.0, %v790_v6 }
  0x98   : > { %791 = vrcp.f32 %v295_v7  ;;  %v410_v7 = vrot.slane (!%p1364_p7), %v409_v62, 4 }
  0xa2   : > { %v792_v8 = vpop.eup %791 }
  0xa3   : > { %v299_v9 = vmul.f32 %v792_v8, %v790_v6  ;;  %v481_v6 = vmin.f32 (!%p1364_p7), %v449_v57, %v455_v60 }
  0xa5   : > { %v300_v10 = vsel %vm298_vm0, %v792_v8, %v299_v9  ;;  %v464_v8 = vrot.slane (!%p1364_p7), %v462_v0, 1  ;;  %v469_v9 = vsub.f32 (!%p1364_p7), %v467_v2, %v468_v3  ;;  %vm553_vm0 = vcmp.eq.s32.totalorder (!%p1364_p7), %v1235_v1, 6 }
  0xa6   : > { %v301_v11 = vmax.f32 %v300_v10, 0.0001  ;;  %v461_v10 = vmul.f32 (!%p1364_p7), %v459_v4, %v457_v63 }
  0xa8   : > { %v302_v12 = vmin.f32 %v301_v11, 0.9999  ;;  %v482_v11 = vsub.f32 (!%p1364_p7), %v480_v5, %v481_v6 }
  0xaa   : > { %v303_v14 = vsub.f32 1.0, %v302_v12  ;;  %v306_v18 = vmul.f32 %v302_v12, %v290_v13  ;;  %v466_v12 = vmul.f32 (!%p1364_p7), %v464_v8, %v462_v0  ;;  %v470_v13 = vmax.f32 (!%p1364_p7), %v469_v9, 0.0 }
  0xac   : > { %v304_v15 = vadd.f32 0.05, %v303_v14  ;;  %v483_v14 = vmax.f32 (!%p1364_p7), %v482_v11, 0.0 }
  0xae   : > { %v305_v17 = vmin.f32 %v304_v15, 1.0 }
  0xb0   : > { %v308_v19 = vmul.f32 %v307_v16, %v305_v17  ;;  %v411_v16 = vmax.f32 (!%p1364_p7), %v409_v62, %v410_v7  ;;  %v472_v17 = vrot.slane (!%p1364_p7), %v470_v13, 1 }
  0xb2   : > { %v309_v20 = vadd.f32 %v308_v19, %v306_v18  ;;  %v475_v18 = vadd.f32 (!%p1364_p7), %v466_v12, %v461_v10 }
  0xb4   : > { %v310_v21 = vmax.f32 %v309_v20, 1e-08  ;;  %v313_v22 = vsub.f32 1.0, %v309_v20  ;;  %v485_v20 = vrot.slane (!%p1364_p7), %v483_v14, 1 }
  0xb6   : > { %793 = vlog2.f32 %v310_v21  ;;  %v314_v23 = vmax.f32 %v313_v22, 0.0  ;;  %v474_v21 = vmul.f32 (!%p1364_p7), %v472_v17, %v470_v13  ;;  %v487_v22 = vmul.f32 (!%p1364_p7), %v485_v20, %v483_v14 }
  0xb7   : > { %795 = vpow2.f32 (!%p1364_p7), %v339_v50 }
  0xb8   : > { %v315_v24 = vmul.f32 %v314_v23, %v314_v23  ;;  %v412_v23 = vrot.slane (!%p1364_p7), %v411_v16, 2 }
  0xba   : > { %v317_v25 = vmul.f32 0.5, %v315_v24 }
  0xbc   : > { %v318_v26 = vmul.f32 %v317_v25, %v315_v24  ;;  %v476_v24 = vsub.f32 (!%p1364_p7), %v475_v18, %v474_v21  ;;  %v489_v25 = vadd.f32 (!%p1364_p7), 1e-07, %v487_v22 }
  0xbe   : > { %v319_v28 = vsel %vm316_vm1, 0.5, %v318_v26  ;;  %v477_v26 = vadd.f32 (!%p1364_p7), 1e-07, %v476_v24  ;;  %vm557_vm1 = vcmp.eq.s32.totalorder (!%p1364_p7), %v1235_v1, 7 }
  0xc0   : > { %v794_v27 = vpop.eup %793 }
  0xc1   : > { %v312_v29 = vmul.f32 0.6931472, %v794_v27  ;;  %v796_v15 = vpop.eup (!%p1364_p7), %795  ;;  %v413_v27 = vmax.f32 (!%p1364_p7), %v411_v16, %v412_v23 }
  0xc2   : > { %v341_v19 = vadd.f32 (!%p1364_p7), 1.0, %v796_v15 }
  0xc3   : > { %v320_v30 = vmul.f32 %v319_v28, %v312_v29  ;;  %v351_v28 = vmax.f32 (!%p1364_p7), %v1248_v39, 0.0  ;;  %v349_v29 = vmin.f32 (!%p1364_p7), %v1248_v39, 0.0  ;;  %v688_v39 = vsel (!%p1364_p7), %vm357_vm9, 1.0, %v1001_v40 }
  0xc4   : > { %797 = vlog2.f32 (!%p1364_p7), %v341_v19 }
  0xc5   : > { %321 = vadd.xlane.f32.xlu0 %v320_v30  ;;  %799 = vrcp.f32 (!%p1364_p7), %v341_v19  ;;  %v414_v30 = vrot.slane (!%p1364_p7), %v413_v27, 1 }
  0xc6   : > { %801 = vrcp.f32 (!%p1364_p7), %v489_v25 }
  0xc7   : > { %803 = vrcp.f32 (!%p1364_p7), %v477_v26  ;;  %v415_v42 = vmax.f32 (!%p1364_p7), %v413_v27, %v414_v30 }
  0xc9   : > { %v416_v55 = vmul.f32 (!%p1364_p7), %v1258_v48, %v415_v42 }
  0xcb   : > { %v431_v62 = vmul.f32 (!%p1364_p7), %v1260_v51, %v416_v55  ;;  %v519_v5 = vsel (!%p1364_p7), %vm365_vm2, %v416_v55, 0.0 }
  0xcd   : > { %v433_v40 = vrot.slane (!%p1364_p7), %v431_v62, 4 }
 0x117   : > { %v392_v51 = vpop.xlane.xlu1 (!%p1364_p7), %391 }
 0x118   : > { %v393_v8 = vrot.slane (!%p1364_p7), %v392_v51, 4 }
 0x11a   : > { %v394_v10 = vadd.f32 (!%p1364_p7), %v393_v8, %v392_v51 }
 0x11c   : > { %v395_v17 = vrot.slane (!%p1364_p7), %v394_v10, 2 }
 0x11d   : > { %v423_v7 = vpop.xlane.xlu1 (!%p1364_p7), %422 }
 0x11e   : > { %v424_v9 = vrot.slane (!%p1364_p7), %v423_v7, 4  ;;  %v396_v30 = vadd.f32 (!%p1364_p7), %v395_v17, %v394_v10 }
 0x120   : > { %v425_v13 = vadd.f32 (!%p1364_p7), %v424_v9, %v423_v7 }
 0x152   : > { %v322_v31 = vpop.xlane.xlu0 %321 }
 0x153   : > { %v323_v32 = vrot.slane %v322_v31, 4 }
 0x155   : > { %v324_v33 = vadd.f32 %v323_v32, %v322_v31  ;;  %v352_v31 = vsub.f32 (!%p1364_p7), 0.0, %v351_v28  ;;  %v798_v32 = vpop.eup (!%p1364_p7), %797 }
 0x157   : > { %v325_v34 = vrot.slane %v324_v33, 2 }
 0x159   : > { %v326_v35 = vadd.f32 %v325_v34, %v324_v33  ;;  %v800_v33 = vpop.eup (!%p1364_p7), %799  ;;  %v343_v34 = vmul.f32 (!%p1364_p7), 0.6931472, %v798_v32 }
 0x15a   : > { %v802_v44 = vpop.eup (!%p1364_p7), %801 }
 0x15b   : > { %v327_v36 = vrot.slane %v326_v35, 1  ;;  %v353_v43 = vsub.f32 (!%p1364_p7), %v352_v31, %v343_v34  ;;  %v804_v46 = vpop.eup (!%p1364_p7), %803 }
 0x15c   : > { %v479_v53 = vmul.f32 (!%p1364_p7), %v804_v46, %v474_v21  ;;  %v426_v21 = vrot.slane (!%p1364_p7), %v425_v13, 2 }
 0x15d   : > { %v328_v37 = vadd.f32 %v327_v36, %v326_v35  ;;  %v488_v35 = vsub.f32 (!%p1364_p7), %v487_v22, %v476_v24  ;;  %v347_v36 = vmul.f32 (!%p1364_p7), %v800_v33, %v796_v15  ;;  %v376_v50 = vmul.f32 (!%p1364_p7), 0.75, %v353_v43 }
 0x15f   : > { %696 = vpush %v328_v37  ;;  %v350_v37 = vsub.f32 (!%p1364_p7), %v349_v29, %v343_v34  ;;  %v348_v45 = vsel (!%p1364_p7), %vm346_vm8, %v800_v33, %v347_v36  ;;  %v491_v52 = vmul.f32 (!%p1364_p7), %v802_v44, %v488_v35  ;;  %v427_v34 = vadd.f32 (!%p1364_p7), %v426_v21, %v425_v13 }
 0x160   : > { %v360_v47 = vsub.f32 (!%p1364_p7), 1.0, %v348_v45  ;;  %v377_v56 = vmul.f32 (!%p1364_p7), %v376_v50, %v348_v45  ;;  %v397_v44 = vrot.slane (!%p1364_p7), %v396_v30, 1 }
 0x161   : > { %v361_v49 = vmul.f32 (!%p1364_p7), 0.25, %v350_v37  ;;  %v492_v57 = vsub.f32 (!%p1364_p7), %v479_v53, %v491_v52  ;;  %v428_v50 = vrot.slane (!%p1364_p7), %v427_v34, 1 }
 0x162   : > { %v378_v59 = vmul.f32 (!%p1364_p7), %v377_v56, %v348_v45  ;;  %v398_v56 = vadd.f32 (!%p1364_p7), %v397_v44, %v396_v30 }
 0x163   : > { %v362_v54 = vmul.f32 (!%p1364_p7), %v361_v49, %v360_v47  ;;  %v493_v60 = vsub.f32 (!%p1364_p7), 1.0, %v492_v57 }
 0x164   : > { %v379_v38 = vmul.f32 (!%p1364_p7), %v688_v39, %v378_v59 }
 0x165   : > { %v363_v58 = vmul.f32 (!%p1364_p7), %v362_v54, %v360_v47  ;;  %v494_v63 = vmul.f32 (!%p1364_p7), %v1258_v48, %v493_v60  ;;  %v505_v4 = vmul.f32 (!%p1364_p7), %v493_v60, %v416_v55 }
 0x166   : > { %v380_v3 = vsel (!%p1364_p7), %vm365_vm2, %v379_v38, 0.0 }
 0x167   : > { %v364_v61 = vmul.f32 (!%p1364_p7), %v1251_v41, %v363_v58  ;;  %v495_v2 = vsel (!%p1364_p7), %vm365_vm2, %v494_v63, 0.0  ;;  %v435_v41 = vsel (!%p1364_p7), %vm420_vm7, %v433_v40, 0.0  ;;  %v507_v6 = vrot.slane (!%p1364_p7), %v505_v4, 4 }
 0x168   : > { %496 = vadd.xlane.f32.xlu1 (!%p1364_p7), %v495_v2  ;;  %v429_v58 = vadd.f32 (!%p1364_p7), %v428_v50, %v427_v34 }
 0x169   : > { %v366_v0 = vsel (!%p1364_p7), %vm365_vm2, %v364_v61, 0.0  ;;  %v509_v48 = vsel (!%p1364_p7), %vm365_vm2, %v507_v6, 0.0  ;;  %vm561_vm2 = vcmp.eq.s32.totalorder (!%p1364_p7), %v1235_v1, 8 }
 0x16a   : > { %367 = vadd.xlane.f32.xlu0 (!%p1364_p7), %v366_v0 }
 0x16c   : > { %520 = vadd.xlane.f32.xlu1 (!%p1364_p7), %v519_v5 }
 0x16e   : > { %381 = vadd.xlane.f32.xlu0 (!%p1364_p7), %v380_v3 }
 0x172   : > { %436 = vadd.xlane.f32.xlu0 (!%p1364_p7), %v435_v41 }
 0x176   : > { %510 = vadd.xlane.f32.xlu0 (!%p1364_p7), %v509_v48 }
 0x18b   : > { %334 = sbr.rel (%p1364_p7) target bundleno = 589 (0x24d), region = 60 }
 0x190   : > { %s1237_s23 = spop %696 }
 0x191   : > { %s330_s9 = ssub.f32 0.0, %s1237_s23 }
 0x1f5   : > { %v497_v14 = vpop.xlane.xlu1 %496 }
 0x1f6   : > { %v498_v15 = vrot.slane %v497_v14, 4 }
 0x1f7   : > { %v368_v11 = vpop.xlane.xlu0 %367 }
 0x1f8   : > { %v369_v12 = vrot.slane %v368_v11, 4  ;;  %v499_v19 = vadd.f32 %v498_v15, %v497_v14 }
 0x1f9   : > { %v521_v23 = vpop.xlane.xlu1 %520 }
 0x1fa   : > { %v370_v16 = vadd.f32 %v369_v12, %v368_v11  ;;  %v522_v24 = vrot.slane %v521_v23, 4  ;;  %v500_v27 = vrot.slane %v499_v19, 2 }
 0x1fb   : > { %v382_v18 = vpop.xlane.xlu0 %381 }
 0x1fc   : > { %v371_v20 = vrot.slane %v370_v16, 2  ;;  %v383_v22 = vrot.slane %v382_v18, 4  ;;  %v523_v29 = vadd.f32 %v522_v24, %v521_v23  ;;  %v501_v45 = vadd.f32 %v500_v27, %v499_v19 }
 0x1fe   : > { %v384_v25 = vadd.f32 %v383_v22, %v382_v18  ;;  %v372_v26 = vadd.f32 %v371_v20, %v370_v16  ;;  %v524_v42 = vrot.slane %v523_v29, 2  ;;  %v502_v39 = vrot.slane %v501_v45, 1 }
 0x1ff   : > { %v437_v28 = vpop.xlane.xlu0 %436  ;;  %v562_v18 = vstv %s330_s9 }
 0x200   : > { %v385_v31 = vrot.slane %v384_v25, 2  ;;  %v438_v32 = vrot.slane %v437_v28, 4  ;;  %v373_v33 = vrot.slane %v372_v26, 1  ;;  %v525_v55 = vadd.f32 %v524_v42, %v523_v29 }
 0x201   : > { %v503_v38 = vadd.f32 %v502_v39, %v501_v45  ;;  %v563_v22 = vsel %vm561_vm2, %v562_v18, 0.0 }
 0x202   : > { %v439_v35 = vadd.f32 %v438_v32, %v437_v28  ;;  %v374_v36 = vadd.f32 %v373_v33, %v372_v26  ;;  %v386_v37 = vadd.f32 %v385_v31, %v384_v25  ;;  %v526_v62 = vrot.slane %v525_v55, 1 }
 0x203   : > { %v511_v43 = vpop.xlane.xlu0 %510 }
 0x204   : > { %v440_v46 = vrot.slane %v439_v35, 2  ;;  %v512_v47 = vrot.slane %v511_v43, 4  ;;  %698 = vpush %v374_v36  ;;  %v387_v49 = vrot.slane %v386_v37, 1  ;;  %v527_v2 = vadd.f32 %v526_v62, %v525_v55 }
 0x206   : > { %v513_v52 = vadd.f32 %v512_v47, %v511_v43  ;;  %v388_v53 = vadd.f32 %v387_v49, %v386_v37  ;;  %v441_v54 = vadd.f32 %v440_v46, %v439_v35 }
 0x208   : > { %v514_v57 = vrot.slane %v513_v52, 2  ;;  %700 = vpush %v388_v53  ;;  %v442_v59 = vrot.slane %v441_v54, 1 }
 0x209   : > { %702 = vpush %v398_v56 }
 0x20a   : > { %v515_v60 = vadd.f32 %v514_v57, %v513_v52  ;;  %704 = vpush %v429_v58  ;;  %v443_v61 = vadd.f32 %v442_v59, %v441_v54 }
 0x20c   : > { %706 = vpush %v443_v61  ;;  %v516_v63 = vrot.slane %v515_v60, 1 }
 0x20d   : > { %708 = vpush %v503_v38 }
 0x20e   : > { %v517_v0 = vadd.f32 %v516_v63, %v515_v60 }
 0x210   : > { %710 = vpush %v517_v0 }
 0x211   : > { %712 = vpush %v527_v2 }
 0x235   : > { %s699_s26 = spop %698 }
 0x236   : > { %v530_v3 = vstv %s699_s26 }
 0x237   : > { %v531_v4 = vsel %vm529_vm10, %v530_v3, 0.0 }
 0x239   : > { %s701_s28 = spop %700 }
 0x23a   : > { %v534_v40 = vstv %s701_s28  ;;  %s703_s21 = spop %702 }
 0x23b   : > { %v535_v5 = vsel %vm533_vm11, %v534_v40, 0.0  ;;  %v538_v41 = vstv %s703_s21  ;;  %s705_s13 = spop %704 }
 0x23c   : > { %v536_v6 = vadd.f32 %v535_v5, %v531_v4  ;;  %v542_v48 = vstv %s705_s13  ;;  %v539_v51 = vsel %vm537_vm12, %v538_v41, 0.0 }
 0x23d   : > { %s707_s11 = spop %706  ;;  %v543_v9 = vsel %vm541_vm13, %v542_v48, 0.0 }
 0x23e   : > { %v540_v7 = vadd.f32 %v539_v51, %v536_v6  ;;  %v546_v8 = vstv %s707_s11  ;;  %s709_s8 = spop %708 }
 0x23f   : > { %v550_v11 = vstv %s709_s8  ;;  %v547_v12 = vsel %vm545_vm14, %v546_v8, 0.0 }
 0x240   : > { %v544_v10 = vadd.f32 %v543_v9, %v540_v7  ;;  %v551_v15 = vsel %vm549_vm15, %v550_v11, 0.0 }
 0x241   : > { %s711_s7 = spop %710 }
 0x242   : > { %v548_v13 = vadd.f32 %v547_v12, %v544_v10  ;;  %v554_v14 = vstv %s711_s7  ;;  %s713_s30 = spop %712 }
 0x243   : > { %v558_v17 = vstv %s713_s30  ;;  %v555_v19 = vsel %vm553_vm0, %v554_v14, 0.0 }
 0x244   : > { %v552_v16 = vadd.f32 %v551_v15, %v548_v13  ;;  %v559_v21 = vsel %vm557_vm1, %v558_v17, 0.0 }
 0x246   : > { %v556_v20 = vadd.f32 %v555_v19, %v552_v16 }
 0x248   : > { %v560_v23 = vadd.f32 %v559_v21, %v556_v20 }
 0x24a   : > { %v564_v24 = vadd.f32 %v563_v22, %v560_v23 }
 0x24c   : > { %565 = vst [vmem:[#allocation9] sm:$0x1] %v564_v24 }
 0x24d PF: > { %p1365_p4 = scmp.eq.s32.totalorder %s1052_s22, 0 }
 0x24e   : > { %vm571_vm3 = vcmp.eq.s32.totalorder (!%p1365_p4), %v1235_v1, 8  ;;  %v572_v26 = vstv (!%p1365_p4), %s330_s9 }
 0x24f   : > { %569 = sbr.rel (%p1365_p4) target bundleno = 599 (0x257), region = 64  ;;  %v573_v27 = vsel (!%p1365_p4), %vm571_vm3, %v572_v26, 0.0 }
 0x253   : > { %v570_v25 = vld [vmem:[#allocation9] sm:$0x1] (!%p1365_p4) }
 0x254   : > { %v574_v28 = vadd.f32 (!%p1365_p4), %v573_v27, %v570_v25 }
 0x256   : > { %575 = vst [vmem:[#allocation9] sm:$0x1] %v574_v28 }
 0x257 PF: > { %p749_p2 = scmp.eq.s32.totalorder %s1052_s22, 1  ;;  %s1002_s12 = smov [#allocation9]  }
 0x258   : > { %s583_s16 = sshll.u32 %s1002_s12, 4  ;;  %s584_s16 = int_to_ptr.vmem [resolvable:$true] %s583_s16 }
 0x259   : > { %s921_s6 = scalar_lea.vmem %s584_s16, 16  ;;  %s927_s14 = scalar_lea.vmem %s584_s16, 32 }
 0x25a   : > { %p922_p10 = scmp.ne.s32.totalorder %s584_s16, %s921_s6  ;;  %p928_p6 = scmp.lt.s32.totalorder %s584_s16, %s584_s16 }
 0x25b   : > { %p929_p8 = scmp.lt.s32.totalorder %s927_s14, %s921_s6 }
 0x25c   : > { %p923_p12 = pnand %p922_p10, %p749_p2 }
 0x25d   : > { %p930_p5 = por %p929_p8, %p928_p6 }
 0x25e   : > { %p924_p1 = pneg %p923_p12 }
 0x260   : > { %p931_p9 = pnand %p930_p5, %p924_p1 }
 0x262   : > { %934 = shalt.err (!%p931_p9)
}
 0x263   : > { %s935_s17 = scalar_lea.hbm %s1338_s5, 16 }
 0x264   : > { %p936_p11 = scmp.ne.s32.totalorder %s1338_s5, %s935_s17  ;;  %p941_p13 = scmp.lt.u32.totalorder %s935_s17, %s1338_s5 }
 0x266   : > { %p937_p0 = pnand %p936_p11, %p749_p2 }
 0x268   : > { %p938_p3 = pneg %p937_p0 }
 0x26a   : > { %p943_p7 = pnand %p941_p13, %p938_p3 }
 0x26c   : > { %946 = shalt.err (!%p943_p7)
}
 0x26d   : > { %727 = dma.vmem_to_hbm [thread:$0]  (%p749_p2), %s584_s16, 16, %s1338_s5, [#allocation4]  }
 0x26e   : > { %976 = dma.done.wait (%p749_p2), [#allocation4], 16  }
 0x26f   : > { %978 = vsyncadd (%p749_p2), [#allocation4], 4294967280 }
 0x270 PF: > { %s1366_s28 = smov %s1114_s18  ;;  %p15_p4 = scmp.ge.s32.totalorder %s1072_s27, 4  }
 0x271   : > { %s1367_s18 = smov %s985_s19  ;;  %s1368_s19 = smov %s989_s20 }
 0x272   : > { %s1369_s20 = smov %s1366_s28  ;;  %s1370_s21 = smov %s1072_s27 }
 0x273   :  { %17 = sbr.rel (!%p15_p4) target bundleno = 4 (0x4), region = 103 }
 0x27a   :  { %596 = vsyncpa [#allocation3], 1 }
 0x27b   :  { %598 = vsyncpa [#allocation3 + $0x1], 1 }
 0x27c   :  { %599 = vsyncpa [#allocation6], 1 }
 0x27d   :  { %600 = vsyncpa [#allocation4], 1 }
 0x27e   :  { %602 = vsyncpa [#allocation4 + $0x1], 1 }

</bundles_post_ra>
